<compile_context>
chip_gen: v6e
topology: v6e:2x2x1
jax: 0.10.0
libtpu: 0.0.40
codegen_flags: <defaults>
</compile_context>

<pallas_src>
import jax
import jax.numpy as jnp
from jax.experimental import pallas as pl
from jax.experimental.pallas import tpu as pltpu


def _round_up(v, m):
    return (v + m - 1) // m * m


# ---------------------------------------------------------------------------
# Pallas kernel
# ---------------------------------------------------------------------------
def make_gru_softmax_kernel(layers, seq, hp8, gwp, cr0, rs, ap):
    """Kernel closed over static sizes.

    hp8 = hidden rounded to 8 (gate lane width AND contraction rows)
    gwp = packed gate width (3*hp8 rounded up to 128)
    cr0 = layer-0 input rows (in_features rounded to 8)
    rs  = per-layer row stride inside wih_pack (= max(cr0, hp8))
    ap  = padded action width (128)

    Ref order:
      inputs : x_pad      (seq, cr0)
               wih_pack   (layers*rs, gwp)     # tight-gate, transposed
               whh_pack   (layers*hp8, gwp)
               small_pack (layers+1, sp_w)     # rows l: [b_gi(r|z|n_ih) | b_hh_n]
                                               # row layers: [b_out | -1e30 pad]
               wout_pad   (hp8, ap)
      outputs: out_slab (seq, 2*ap) = [probs | logp]
               h_final  (layers, hp8)
    """

    def kernel(x_ref, wih_ref, whh_ref, small_ref, wout_ref, out_ref, hout_ref):

        def gru_cell(gi, gh, b_hh_n, h):
            # one sigmoid pass (one EUP vreg) covers the r|z lanes
            s = jax.nn.sigmoid(gi + gh)
            r = s[:, 0:hp8]
            z = s[:, hp8:2 * hp8]
            n = jnp.tanh(gi[:, 2 * hp8:3 * hp8]
                         + r * (gh[:, 2 * hp8:3 * hp8] + b_hh_n))
            return (1.0 - z) * n + z * h

        layer_in = x_ref[...]                         # (seq, cr0)
        in_rows = cr0
        h_finals = []
        for l in range(layers):
            # --- batched input-gate matmul for ALL timesteps of this layer ---
            w_in = wih_ref[l * rs:l * rs + in_rows, :]        # (in_rows, gwp)
            b_gi = small_ref[l:l + 1, 0:gwp]                  # (1, gwp)
            b_hh_n = small_ref[l:l + 1, gwp:gwp + hp8]        # (1, hp8)
            gi_all = jnp.dot(layer_in, w_in,
                             preferred_element_type=jnp.float32) + b_gi

            # loop-invariant recurrent weights (held in vregs across the scan)
            whh_l = whh_ref[l * hp8:(l + 1) * hp8, :]         # (hp8, gwp)

            h = jnp.zeros((1, hp8), jnp.float32)              # reset_hidden()
            hs = []
            for t in range(seq):                              # serial, unrolled
                gh = jnp.dot(h, whh_l, preferred_element_type=jnp.float32)
                h = gru_cell(gi_all[t:t + 1, :], gh, b_hh_n, h)
                hs.append(h)
            layer_in = jnp.concatenate(hs, axis=0)            # (seq, hp8)
            in_rows = hp8
            h_finals.append(h)

        # --- hoisted output head: one matmul + vectorized softmax ----------
        # (padded action lanes carry bias -1e30 -> prob 0, finite logp)
        logits = (jnp.dot(layer_in, wout_ref[...],
                          preferred_element_type=jnp.float32)
                  + small_ref[layers:layers + 1, 0:ap])
        m = jnp.max(logits, axis=-1, keepdims=True)
        e = jnp.exp(logits - m)
        ssum = jnp.sum(e, axis=-1, keepdims=True)
        p = e / ssum
        lp = (logits - m) - jnp.log(ssum)
        out_ref[...] = jnp.concatenate([p, lp], axis=1)       # lane-dense store
        hout_ref[...] = jnp.concatenate(h_finals, axis=0)

    return kernel


# ---------------------------------------------------------------------------
# Wrapper-side parameter packing (one-time XLA work; tight gate/lane padding)
# ---------------------------------------------------------------------------
def pack_params(params, layers, hidden, in_features, n_act,
                hp8, gwp, rs, ap, sp_w, neg_big):
    assert 3 * hp8 <= gwp and n_act <= ap
    wih_rows, whh_rows, small_rows = [], [], []
    for l in range(layers):
        in_l = in_features if l == 0 else hidden
        w_ih = params[f"w_ih_{l}"]                    # (3H, in_l)
        w_hh = params[f"w_hh_{l}"]                    # (3H, H)
        b_ih = params[f"b_ih_{l}"]                    # (3H,)
        b_hh = params[f"b_hh_{l}"]                    # (3H,)
        wih_p = jnp.zeros((rs, gwp), jnp.float32)
        whh_p = jnp.zeros((hp8, gwp), jnp.float32)
        for g in range(3):                            # gate order: r, z, n
            cols = slice(g * hp8, g * hp8 + hidden)
            wih_p = wih_p.at[:in_l, cols].set(
                w_ih[g * hidden:(g + 1) * hidden, :].T)
            whh_p = whh_p.at[:hidden, cols].set(
                w_hh[g * hidden:(g + 1) * hidden, :].T)
        # fold r/z biases (b_ih + b_hh); keep the n gate's b_hh separate
        srow = jnp.zeros((sp_w,), jnp.float32)
        srow = srow.at[0:hidden].set(b_ih[:hidden] + b_hh[:hidden])
        srow = srow.at[hp8:hp8 + hidden].set(
            b_ih[hidden:2 * hidden] + b_hh[hidden:2 * hidden])
        srow = srow.at[2 * hp8:2 * hp8 + hidden].set(b_ih[2 * hidden:])
        srow = srow.at[gwp:gwp + hidden].set(b_hh[2 * hidden:])
        wih_rows.append(wih_p)
        whh_rows.append(whh_p)
        small_rows.append(srow)
    # output-head bias row (padded action lanes -> -1e30 => prob 0)
    brow = jnp.zeros((sp_w,), jnp.float32)
    brow = brow.at[0:ap].set(neg_big)
    brow = brow.at[0:n_act].set(params["b_out"])
    small_rows.append(brow)

    wih_pack = jnp.concatenate(wih_rows, axis=0)      # (layers*rs, gwp)
    whh_pack = jnp.concatenate(whh_rows, axis=0)      # (layers*hp8, gwp)
    small_pack = jnp.stack(small_rows, axis=0)        # (layers+1, sp_w)
    wout_pad = jnp.zeros((hp8, ap), jnp.float32).at[:hidden, :n_act].set(
        params["w_out"].T)
    return wih_pack, whh_pack, small_pack, wout_pad


# ---------------------------------------------------------------------------
# Forward wrapper (glue: concat, padding, pallas_call, sampling)
# ---------------------------------------------------------------------------
def softmax_rnn_agent_forward(x, params, layers, hidden, n_act, sample_key):
    """x: (seq, 1, feat_half) float32.  First-call path: p_state = x."""
    seq = x.shape[0]
    in_features = 2 * x.shape[-1]
    neg_big = -1e30

    hp8 = _round_up(hidden, 8)
    gwp = max(128, _round_up(3 * hp8, 128))
    cr0 = _round_up(in_features, 8)
    rs = max(cr0, hp8)
    ap = max(128, _round_up(n_act, 128))
    sp_w = max(2 * gwp, ap)

    x_cat = jnp.concatenate([x, x], axis=-1).reshape(seq, in_features)
    x_pad = jnp.zeros((seq, cr0), jnp.float32).at[:, :in_features].set(
        x_cat.astype(jnp.float32))

    wih_pack, whh_pack, small_pack, wout_pad = pack_params(
        params, layers, hidden, in_features, n_act, hp8, gwp, rs, ap, sp_w,
        neg_big)

    vmem = pl.BlockSpec(memory_space=pltpu.MemorySpace.VMEM)
    kernel = make_gru_softmax_kernel(layers, seq, hp8, gwp, cr0, rs, ap)
    slab, h_final_pad = pl.pallas_call(
        kernel,
        out_shape=(jax.ShapeDtypeStruct((seq, 2 * ap), jnp.float32),
                   jax.ShapeDtypeStruct((layers, hp8), jnp.float32)),
        in_specs=[vmem] * 5,
        out_specs=(vmem, vmem),
    )(x_pad, wih_pack, whh_pack, small_pack, wout_pad)

    probs = slab[:, :n_act]
    logp = slab[:, ap:ap + n_act]
    entropy = -jnp.sum(probs * logp, axis=-1)
    h_final = h_final_pad[:, :hidden]

    # glue: Categorical sample per step, "logit" = -log_prob(action)
    actions = jax.random.categorical(sample_key, logp, axis=-1)   # (seq,)
    neg_log_prob = -jnp.take_along_axis(logp, actions[:, None], axis=1)[:, 0]
    return actions, neg_log_prob, entropy, probs, h_final


# ---------------------------------------------------------------------------
# Pure-JAX reference (for correctness check)
# ---------------------------------------------------------------------------
def reference_forward(x, params, layers, hidden):
    seq = x.shape[0]
    x2d = jnp.concatenate([x, x], axis=-1).reshape(seq, -1)
    h = [jnp.zeros((1, hidden), jnp.float32) for _ in range(layers)]
    probs, ents = [], []
    for t in range(seq):
        inp = x2d[t:t + 1]
        for l in range(layers):
            gi = inp @ params[f"w_ih_{l}"].T + params[f"b_ih_{l}"]
            gh = h[l] @ params[f"w_hh_{l}"].T + params[f"b_hh_{l}"]
            r = jax.nn.sigmoid(gi[:, :hidden] + gh[:, :hidden])
            z = jax.nn.sigmoid(gi[:, hidden:2 * hidden] + gh[:, hidden:2 * hidden])
            n = jnp.tanh(gi[:, 2 * hidden:] + r * gh[:, 2 * hidden:])
            h[l] = (1.0 - z) * n + z * h[l]
            inp = h[l]
        logits = inp @ params["w_out"].T + params["b_out"]
        p = jax.nn.softmax(logits, axis=-1)
        lp = jax.nn.log_softmax(logits, axis=-1)
        probs.append(p)
        ents.append(-jnp.sum(p * lp, axis=-1))
    return (jnp.concatenate(probs, 0),
            jnp.concatenate(ents, 0),
            jnp.concatenate(h, 0))


# ---------------------------------------------------------------------------
# Deterministic parameter init (shapes from Softmax_RNN_Agent.__init__)
# ---------------------------------------------------------------------------
def init_params(key, in_features, hidden, layers, n_act):
    params = {}
    k = 1.0 / jnp.sqrt(hidden)
    for l in range(layers):
        in_l = in_features if l == 0 else hidden
        key, k1, k2, k3, k4 = jax.random.split(key, 5)
        params[f"w_ih_{l}"] = jax.random.uniform(k1, (3 * hidden, in_l),
                                                 jnp.float32, -k, k)
        params[f"w_hh_{l}"] = jax.random.uniform(k2, (3 * hidden, hidden),
                                                 jnp.float32, -k, k)
        params[f"b_ih_{l}"] = jax.random.uniform(k3, (3 * hidden,),
                                                 jnp.float32, -k, k)
        params[f"b_hh_{l}"] = jax.random.uniform(k4, (3 * hidden,),
                                                 jnp.float32, -k, k)
    key, k5, k6 = jax.random.split(key, 3)
    ko = 1.0 / jnp.sqrt(hidden)
    params["w_out"] = jax.random.uniform(k5, (n_act, hidden),
                                         jnp.float32, -ko, ko)
    params["b_out"] = jax.random.uniform(k6, (n_act,), jnp.float32, -ko, ko)
    return params


if __name__ == "__main__":
    # small shapes consistent with the module
    SEQ, BATCH, FEAT_HALF = 8, 1, 16
    IN_FEATURES = 2 * FEAT_HALF          # after cat(x, x)
    HIDDEN = 32
    LAYERS = 2
    N_ACT = 8

    root = jax.random.PRNGKey(0)
    k_x, k_p, k_s = jax.random.split(root, 3)
    x = jax.random.normal(k_x, (SEQ, BATCH, FEAT_HALF), jnp.float32)
    params = init_params(k_p, IN_FEATURES, HIDDEN, LAYERS, N_ACT)

    actions, neg_logp, entropy, probs, h_final = softmax_rnn_agent_forward(
        x, params, LAYERS, HIDDEN, N_ACT, k_s)
    jax.block_until_ready((actions, neg_logp, entropy, probs, h_final))

    # correctness check vs pure-JAX reference
    ref_probs, ref_ent, ref_h = reference_forward(x, params, LAYERS, HIDDEN)
    assert jnp.allclose(probs, ref_probs, atol=1e-4, rtol=1e-4)
    assert jnp.allclose(entropy, ref_ent, atol=1e-4, rtol=1e-4)
    assert jnp.allclose(h_final, ref_h, atol=1e-4, rtol=1e-4)

    print("KERNEL_OK")
</pallas_src>

<mosaic_0001>
module attributes {stable_mosaic.version = 11 : i64} {
  func.func @kernel(%arg0: memref<8x32xf32, #tpu.memory_space<vmem>>, %arg1: memref<64x128xf32, #tpu.memory_space<vmem>>, %arg2: memref<64x128xf32, #tpu.memory_space<vmem>>, %arg3: memref<3x256xf32, #tpu.memory_space<vmem>>, %arg4: memref<32x128xf32, #tpu.memory_space<vmem>>, %arg5: memref<8x256xf32, #tpu.memory_space<vmem>>, %arg6: memref<2x32xf32, #tpu.memory_space<vmem>>) attributes {dimension_semantics = [], scalar_prefetch = 0 : i64, scratch_operands = 0 : i64, tpu.core_type = #tpu.core_type<tc>} {
    %c0 = arith.constant 0 : index
    %c0_0 = arith.constant 0 : index
    %0 = vector.load %arg0[%c0, %c0_0] : memref<8x32xf32, #tpu.memory_space<vmem>>, vector<8x32xf32>
    %c0_1 = arith.constant 0 : index
    %c0_2 = arith.constant 0 : index
    %1 = vector.load %arg1[%c0_1, %c0_2] : memref<64x128xf32, #tpu.memory_space<vmem>>, vector<32x128xf32>
    %c0_3 = arith.constant 0 : index
    %c0_4 = arith.constant 0 : index
    %2 = vector.load %arg3[%c0_3, %c0_4] : memref<3x256xf32, #tpu.memory_space<vmem>>, vector<1x128xf32>
    %c0_5 = arith.constant 0 : index
    %c128 = arith.constant 128 : index
    %3 = vector.load %arg3[%c0_5, %c128] : memref<3x256xf32, #tpu.memory_space<vmem>>, vector<1x32xf32>
    %cst = arith.constant dense<0.000000e+00> : vector<8x128xf32>
    %4 = tpu.matmul %0, %1, %cst {dimension_numbers = #tpu.dot_dimension_numbers<[1], [0], [0], [1], [0, 0, 1, 1], [], []>} : vector<8x32xf32>, vector<32x128xf32>, vector<8x128xf32> -> vector<8x128xf32>
    %5 = vector.broadcast %2 : vector<1x128xf32> to vector<8x128xf32>
    %6 = arith.addf %4, %5 : vector<8x128xf32>
    %c0_6 = arith.constant 0 : index
    %c0_7 = arith.constant 0 : index
    %7 = vector.load %arg2[%c0_6, %c0_7] : memref<64x128xf32, #tpu.memory_space<vmem>>, vector<32x128xf32>
    %cst_8 = arith.constant 0.000000e+00 : f32
    %8 = vector.broadcast %cst_8 : f32 to vector<1x32xf32>
    %cst_9 = arith.constant dense<0.000000e+00> : vector<1x128xf32>
    %9 = tpu.matmul %8, %7, %cst_9 {dimension_numbers = #tpu.dot_dimension_numbers<[1], [0], [0], [1], [0, 0, 1, 1], [], []>} : vector<1x32xf32>, vector<32x128xf32>, vector<1x128xf32> -> vector<1x128xf32>
    %10 = vector.extract_strided_slice %6 {offsets = [0, 0], sizes = [1, 128], strides = [1, 1]} : vector<8x128xf32> to vector<1x128xf32>
    %11 = arith.addf %10, %9 : vector<1x128xf32>
    %12 = arith.negf %11 : vector<1x128xf32>
    %13 = math.exp %12 : vector<1x128xf32>
    %cst_10 = arith.constant 1.000000e+00 : f32
    %14 = vector.broadcast %cst_10 : f32 to vector<1x128xf32>
    %15 = arith.addf %14, %13 : vector<1x128xf32>
    %16 = arith.divf %14, %15 : vector<1x128xf32>
    %17 = vector.extract_strided_slice %16 {offsets = [0, 0], sizes = [1, 32], strides = [1, 1]} : vector<1x128xf32> to vector<1x32xf32>
    %18 = vector.extract_strided_slice %16 {offsets = [0, 32], sizes = [1, 32], strides = [1, 1]} : vector<1x128xf32> to vector<1x32xf32>
    %19 = vector.extract_strided_slice %10 {offsets = [0, 64], sizes = [1, 32], strides = [1, 1]} : vector<1x128xf32> to vector<1x32xf32>
    %20 = vector.extract_strided_slice %9 {offsets = [0, 64], sizes = [1, 32], strides = [1, 1]} : vector<1x128xf32> to vector<1x32xf32>
    %21 = arith.addf %20, %3 : vector<1x32xf32>
    %22 = arith.mulf %17, %21 : vector<1x32xf32>
    %23 = arith.addf %19, %22 : vector<1x32xf32>
    %24 = math.tanh %23 : vector<1x32xf32>
    %cst_11 = arith.constant 1.000000e+00 : f32
    %25 = vector.broadcast %cst_11 : f32 to vector<1x32xf32>
    %26 = arith.subf %25, %18 : vector<1x32xf32>
    %27 = arith.mulf %26, %24 : vector<1x32xf32>
    %28 = arith.mulf %18, %8 : vector<1x32xf32>
    %29 = arith.addf %27, %28 : vector<1x32xf32>
    %cst_12 = arith.constant dense<0.000000e+00> : vector<1x128xf32>
    %30 = tpu.matmul %29, %7, %cst_12 {dimension_numbers = #tpu.dot_dimension_numbers<[1], [0], [0], [1], [0, 0, 1, 1], [], []>} : vector<1x32xf32>, vector<32x128xf32>, vector<1x128xf32> -> vector<1x128xf32>
    %31 = vector.extract_strided_slice %6 {offsets = [1, 0], sizes = [1, 128], strides = [1, 1]} : vector<8x128xf32> to vector<1x128xf32>
    %32 = arith.addf %31, %30 : vector<1x128xf32>
    %33 = arith.negf %32 : vector<1x128xf32>
    %34 = math.exp %33 : vector<1x128xf32>
    %cst_13 = arith.constant 1.000000e+00 : f32
    %35 = vector.broadcast %cst_13 : f32 to vector<1x128xf32>
    %36 = arith.addf %35, %34 : vector<1x128xf32>
    %37 = arith.divf %35, %36 : vector<1x128xf32>
    %38 = vector.extract_strided_slice %37 {offsets = [0, 0], sizes = [1, 32], strides = [1, 1]} : vector<1x128xf32> to vector<1x32xf32>
    %39 = vector.extract_strided_slice %37 {offsets = [0, 32], sizes = [1, 32], strides = [1, 1]} : vector<1x128xf32> to vector<1x32xf32>
    %40 = vector.extract_strided_slice %31 {offsets = [0, 64], sizes = [1, 32], strides = [1, 1]} : vector<1x128xf32> to vector<1x32xf32>
    %41 = vector.extract_strided_slice %30 {offsets = [0, 64], sizes = [1, 32], strides = [1, 1]} : vector<1x128xf32> to vector<1x32xf32>
    %42 = arith.addf %41, %3 : vector<1x32xf32>
    %43 = arith.mulf %38, %42 : vector<1x32xf32>
    %44 = arith.addf %40, %43 : vector<1x32xf32>
    %45 = math.tanh %44 : vector<1x32xf32>
    %cst_14 = arith.constant 1.000000e+00 : f32
    %46 = vector.broadcast %cst_14 : f32 to vector<1x32xf32>
    %47 = arith.subf %46, %39 : vector<1x32xf32>
    %48 = arith.mulf %47, %45 : vector<1x32xf32>
    %49 = arith.mulf %39, %29 : vector<1x32xf32>
    %50 = arith.addf %48, %49 : vector<1x32xf32>
    %cst_15 = arith.constant dense<0.000000e+00> : vector<1x128xf32>
    %51 = tpu.matmul %50, %7, %cst_15 {dimension_numbers = #tpu.dot_dimension_numbers<[1], [0], [0], [1], [0, 0, 1, 1], [], []>} : vector<1x32xf32>, vector<32x128xf32>, vector<1x128xf32> -> vector<1x128xf32>
    %52 = vector.extract_strided_slice %6 {offsets = [2, 0], sizes = [1, 128], strides = [1, 1]} : vector<8x128xf32> to vector<1x128xf32>
    %53 = arith.addf %52, %51 : vector<1x128xf32>
    %54 = arith.negf %53 : vector<1x128xf32>
    %55 = math.exp %54 : vector<1x128xf32>
    %cst_16 = arith.constant 1.000000e+00 : f32
    %56 = vector.broadcast %cst_16 : f32 to vector<1x128xf32>
    %57 = arith.addf %56, %55 : vector<1x128xf32>
    %58 = arith.divf %56, %57 : vector<1x128xf32>
    %59 = vector.extract_strided_slice %58 {offsets = [0, 0], sizes = [1, 32], strides = [1, 1]} : vector<1x128xf32> to vector<1x32xf32>
    %60 = vector.extract_strided_slice %58 {offsets = [0, 32], sizes = [1, 32], strides = [1, 1]} : vector<1x128xf32> to vector<1x32xf32>
    %61 = vector.extract_strided_slice %52 {offsets = [0, 64], sizes = [1, 32], strides = [1, 1]} : vector<1x128xf32> to vector<1x32xf32>
    %62 = vector.extract_strided_slice %51 {offsets = [0, 64], sizes = [1, 32], strides = [1, 1]} : vector<1x128xf32> to vector<1x32xf32>
    %63 = arith.addf %62, %3 : vector<1x32xf32>
    %64 = arith.mulf %59, %63 : vector<1x32xf32>
    %65 = arith.addf %61, %64 : vector<1x32xf32>
    %66 = math.tanh %65 : vector<1x32xf32>
    %cst_17 = arith.constant 1.000000e+00 : f32
    %67 = vector.broadcast %cst_17 : f32 to vector<1x32xf32>
    %68 = arith.subf %67, %60 : vector<1x32xf32>
    %69 = arith.mulf %68, %66 : vector<1x32xf32>
    %70 = arith.mulf %60, %50 : vector<1x32xf32>
    %71 = arith.addf %69, %70 : vector<1x32xf32>
    %cst_18 = arith.constant dense<0.000000e+00> : vector<1x128xf32>
    %72 = tpu.matmul %71, %7, %cst_18 {dimension_numbers = #tpu.dot_dimension_numbers<[1], [0], [0], [1], [0, 0, 1, 1], [], []>} : vector<1x32xf32>, vector<32x128xf32>, vector<1x128xf32> -> vector<1x128xf32>
    %73 = vector.extract_strided_slice %6 {offsets = [3, 0], sizes = [1, 128], strides = [1, 1]} : vector<8x128xf32> to vector<1x128xf32>
    %74 = arith.addf %73, %72 : vector<1x128xf32>
    %75 = arith.negf %74 : vector<1x128xf32>
    %76 = math.exp %75 : vector<1x128xf32>
    %cst_19 = arith.constant 1.000000e+00 : f32
    %77 = vector.broadcast %cst_19 : f32 to vector<1x128xf32>
    %78 = arith.addf %77, %76 : vector<1x128xf32>
    %79 = arith.divf %77, %78 : vector<1x128xf32>
    %80 = vector.extract_strided_slice %79 {offsets = [0, 0], sizes = [1, 32], strides = [1, 1]} : vector<1x128xf32> to vector<1x32xf32>
    %81 = vector.extract_strided_slice %79 {offsets = [0, 32], sizes = [1, 32], strides = [1, 1]} : vector<1x128xf32> to vector<1x32xf32>
    %82 = vector.extract_strided_slice %73 {offsets = [0, 64], sizes = [1, 32], strides = [1, 1]} : vector<1x128xf32> to vector<1x32xf32>
    %83 = vector.extract_strided_slice %72 {offsets = [0, 64], sizes = [1, 32], strides = [1, 1]} : vector<1x128xf32> to vector<1x32xf32>
    %84 = arith.addf %83, %3 : vector<1x32xf32>
    %85 = arith.mulf %80, %84 : vector<1x32xf32>
    %86 = arith.addf %82, %85 : vector<1x32xf32>
    %87 = math.tanh %86 : vector<1x32xf32>
    %cst_20 = arith.constant 1.000000e+00 : f32
    %88 = vector.broadcast %cst_20 : f32 to vector<1x32xf32>
    %89 = arith.subf %88, %81 : vector<1x32xf32>
    %90 = arith.mulf %89, %87 : vector<1x32xf32>
    %91 = arith.mulf %81, %71 : vector<1x32xf32>
    %92 = arith.addf %90, %91 : vector<1x32xf32>
    %cst_21 = arith.constant dense<0.000000e+00> : vector<1x128xf32>
    %93 = tpu.matmul %92, %7, %cst_21 {dimension_numbers = #tpu.dot_dimension_numbers<[1], [0], [0], [1], [0, 0, 1, 1], [], []>} : vector<1x32xf32>, vector<32x128xf32>, vector<1x128xf32> -> vector<1x128xf32>
    %94 = vector.extract_strided_slice %6 {offsets = [4, 0], sizes = [1, 128], strides = [1, 1]} : vector<8x128xf32> to vector<1x128xf32>
    %95 = arith.addf %94, %93 : vector<1x128xf32>
    %96 = arith.negf %95 : vector<1x128xf32>
    %97 = math.exp %96 : vector<1x128xf32>
    %cst_22 = arith.constant 1.000000e+00 : f32
    %98 = vector.broadcast %cst_22 : f32 to vector<1x128xf32>
    %99 = arith.addf %98, %97 : vector<1x128xf32>
    %100 = arith.divf %98, %99 : vector<1x128xf32>
    %101 = vector.extract_strided_slice %100 {offsets = [0, 0], sizes = [1, 32], strides = [1, 1]} : vector<1x128xf32> to vector<1x32xf32>
    %102 = vector.extract_strided_slice %100 {offsets = [0, 32], sizes = [1, 32], strides = [1, 1]} : vector<1x128xf32> to vector<1x32xf32>
    %103 = vector.extract_strided_slice %94 {offsets = [0, 64], sizes = [1, 32], strides = [1, 1]} : vector<1x128xf32> to vector<1x32xf32>
    %104 = vector.extract_strided_slice %93 {offsets = [0, 64], sizes = [1, 32], strides = [1, 1]} : vector<1x128xf32> to vector<1x32xf32>
    %105 = arith.addf %104, %3 : vector<1x32xf32>
    %106 = arith.mulf %101, %105 : vector<1x32xf32>
    %107 = arith.addf %103, %106 : vector<1x32xf32>
    %108 = math.tanh %107 : vector<1x32xf32>
    %cst_23 = arith.constant 1.000000e+00 : f32
    %109 = vector.broadcast %cst_23 : f32 to vector<1x32xf32>
    %110 = arith.subf %109, %102 : vector<1x32xf32>
    %111 = arith.mulf %110, %108 : vector<1x32xf32>
    %112 = arith.mulf %102, %92 : vector<1x32xf32>
    %113 = arith.addf %111, %112 : vector<1x32xf32>
    %cst_24 = arith.constant dense<0.000000e+00> : vector<1x128xf32>
    %114 = tpu.matmul %113, %7, %cst_24 {dimension_numbers = #tpu.dot_dimension_numbers<[1], [0], [0], [1], [0, 0, 1, 1], [], []>} : vector<1x32xf32>, vector<32x128xf32>, vector<1x128xf32> -> vector<1x128xf32>
    %115 = vector.extract_strided_slice %6 {offsets = [5, 0], sizes = [1, 128], strides = [1, 1]} : vector<8x128xf32> to vector<1x128xf32>
    %116 = arith.addf %115, %114 : vector<1x128xf32>
    %117 = arith.negf %116 : vector<1x128xf32>
    %118 = math.exp %117 : vector<1x128xf32>
    %cst_25 = arith.constant 1.000000e+00 : f32
    %119 = vector.broadcast %cst_25 : f32 to vector<1x128xf32>
    %120 = arith.addf %119, %118 : vector<1x128xf32>
    %121 = arith.divf %119, %120 : vector<1x128xf32>
    %122 = vector.extract_strided_slice %121 {offsets = [0, 0], sizes = [1, 32], strides = [1, 1]} : vector<1x128xf32> to vector<1x32xf32>
    %123 = vector.extract_strided_slice %121 {offsets = [0, 32], sizes = [1, 32], strides = [1, 1]} : vector<1x128xf32> to vector<1x32xf32>
    %124 = vector.extract_strided_slice %115 {offsets = [0, 64], sizes = [1, 32], strides = [1, 1]} : vector<1x128xf32> to vector<1x32xf32>
    %125 = vector.extract_strided_slice %114 {offsets = [0, 64], sizes = [1, 32], strides = [1, 1]} : vector<1x128xf32> to vector<1x32xf32>
    %126 = arith.addf %125, %3 : vector<1x32xf32>
    %127 = arith.mulf %122, %126 : vector<1x32xf32>
    %128 = arith.addf %124, %127 : vector<1x32xf32>
    %129 = math.tanh %128 : vector<1x32xf32>
    %cst_26 = arith.constant 1.000000e+00 : f32
    %130 = vector.broadcast %cst_26 : f32 to vector<1x32xf32>
    %131 = arith.subf %130, %123 : vector<1x32xf32>
    %132 = arith.mulf %131, %129 : vector<1x32xf32>
    %133 = arith.mulf %123, %113 : vector<1x32xf32>
    %134 = arith.addf %132, %133 : vector<1x32xf32>
    %cst_27 = arith.constant dense<0.000000e+00> : vector<1x128xf32>
    %135 = tpu.matmul %134, %7, %cst_27 {dimension_numbers = #tpu.dot_dimension_numbers<[1], [0], [0], [1], [0, 0, 1, 1], [], []>} : vector<1x32xf32>, vector<32x128xf32>, vector<1x128xf32> -> vector<1x128xf32>
    %136 = vector.extract_strided_slice %6 {offsets = [6, 0], sizes = [1, 128], strides = [1, 1]} : vector<8x128xf32> to vector<1x128xf32>
    %137 = arith.addf %136, %135 : vector<1x128xf32>
    %138 = arith.negf %137 : vector<1x128xf32>
    %139 = math.exp %138 : vector<1x128xf32>
    %cst_28 = arith.constant 1.000000e+00 : f32
    %140 = vector.broadcast %cst_28 : f32 to vector<1x128xf32>
    %141 = arith.addf %140, %139 : vector<1x128xf32>
    %142 = arith.divf %140, %141 : vector<1x128xf32>
    %143 = vector.extract_strided_slice %142 {offsets = [0, 0], sizes = [1, 32], strides = [1, 1]} : vector<1x128xf32> to vector<1x32xf32>
    %144 = vector.extract_strided_slice %142 {offsets = [0, 32], sizes = [1, 32], strides = [1, 1]} : vector<1x128xf32> to vector<1x32xf32>
    %145 = vector.extract_strided_slice %136 {offsets = [0, 64], sizes = [1, 32], strides = [1, 1]} : vector<1x128xf32> to vector<1x32xf32>
    %146 = vector.extract_strided_slice %135 {offsets = [0, 64], sizes = [1, 32], strides = [1, 1]} : vector<1x128xf32> to vector<1x32xf32>
    %147 = arith.addf %146, %3 : vector<1x32xf32>
    %148 = arith.mulf %143, %147 : vector<1x32xf32>
    %149 = arith.addf %145, %148 : vector<1x32xf32>
    %150 = math.tanh %149 : vector<1x32xf32>
    %cst_29 = arith.constant 1.000000e+00 : f32
    %151 = vector.broadcast %cst_29 : f32 to vector<1x32xf32>
    %152 = arith.subf %151, %144 : vector<1x32xf32>
    %153 = arith.mulf %152, %150 : vector<1x32xf32>
    %154 = arith.mulf %144, %134 : vector<1x32xf32>
    %155 = arith.addf %153, %154 : vector<1x32xf32>
    %cst_30 = arith.constant dense<0.000000e+00> : vector<1x128xf32>
    %156 = tpu.matmul %155, %7, %cst_30 {dimension_numbers = #tpu.dot_dimension_numbers<[1], [0], [0], [1], [0, 0, 1, 1], [], []>} : vector<1x32xf32>, vector<32x128xf32>, vector<1x128xf32> -> vector<1x128xf32>
    %157 = vector.extract_strided_slice %6 {offsets = [7, 0], sizes = [1, 128], strides = [1, 1]} : vector<8x128xf32> to vector<1x128xf32>
    %158 = arith.addf %157, %156 : vector<1x128xf32>
    %159 = arith.negf %158 : vector<1x128xf32>
    %160 = math.exp %159 : vector<1x128xf32>
    %cst_31 = arith.constant 1.000000e+00 : f32
    %161 = vector.broadcast %cst_31 : f32 to vector<1x128xf32>
    %162 = arith.addf %161, %160 : vector<1x128xf32>
    %163 = arith.divf %161, %162 : vector<1x128xf32>
    %164 = vector.extract_strided_slice %163 {offsets = [0, 0], sizes = [1, 32], strides = [1, 1]} : vector<1x128xf32> to vector<1x32xf32>
    %165 = vector.extract_strided_slice %163 {offsets = [0, 32], sizes = [1, 32], strides = [1, 1]} : vector<1x128xf32> to vector<1x32xf32>
    %166 = vector.extract_strided_slice %157 {offsets = [0, 64], sizes = [1, 32], strides = [1, 1]} : vector<1x128xf32> to vector<1x32xf32>
    %167 = vector.extract_strided_slice %156 {offsets = [0, 64], sizes = [1, 32], strides = [1, 1]} : vector<1x128xf32> to vector<1x32xf32>
    %168 = arith.addf %167, %3 : vector<1x32xf32>
    %169 = arith.mulf %164, %168 : vector<1x32xf32>
    %170 = arith.addf %166, %169 : vector<1x32xf32>
    %171 = math.tanh %170 : vector<1x32xf32>
    %cst_32 = arith.constant 1.000000e+00 : f32
    %172 = vector.broadcast %cst_32 : f32 to vector<1x32xf32>
    %173 = arith.subf %172, %165 : vector<1x32xf32>
    %174 = arith.mulf %173, %171 : vector<1x32xf32>
    %175 = arith.mulf %165, %155 : vector<1x32xf32>
    %176 = arith.addf %174, %175 : vector<1x32xf32>
    %177 = tpu.concatenate %29, %50, %71, %92, %113, %134, %155, %176 in 0 : vector<1x32xf32>, vector<1x32xf32>, vector<1x32xf32>, vector<1x32xf32>, vector<1x32xf32>, vector<1x32xf32>, vector<1x32xf32>, vector<1x32xf32> -> vector<8x32xf32>
    %c32 = arith.constant 32 : index
    %c0_33 = arith.constant 0 : index
    %178 = vector.load %arg1[%c32, %c0_33] : memref<64x128xf32, #tpu.memory_space<vmem>>, vector<32x128xf32>
    %c1 = arith.constant 1 : index
    %c0_34 = arith.constant 0 : index
    %179 = vector.load %arg3[%c1, %c0_34] : memref<3x256xf32, #tpu.memory_space<vmem>>, vector<1x128xf32>
    %c1_35 = arith.constant 1 : index
    %c128_36 = arith.constant 128 : index
    %180 = vector.load %arg3[%c1_35, %c128_36] : memref<3x256xf32, #tpu.memory_space<vmem>>, vector<1x32xf32>
    %cst_37 = arith.constant dense<0.000000e+00> : vector<8x128xf32>
    %181 = tpu.matmul %177, %178, %cst_37 {dimension_numbers = #tpu.dot_dimension_numbers<[1], [0], [0], [1], [0, 0, 1, 1], [], []>} : vector<8x32xf32>, vector<32x128xf32>, vector<8x128xf32> -> vector<8x128xf32>
    %182 = vector.broadcast %179 : vector<1x128xf32> to vector<8x128xf32>
    %183 = arith.addf %181, %182 : vector<8x128xf32>
    %c32_38 = arith.constant 32 : index
    %c0_39 = arith.constant 0 : index
    %184 = vector.load %arg2[%c32_38, %c0_39] : memref<64x128xf32, #tpu.memory_space<vmem>>, vector<32x128xf32>
    %cst_40 = arith.constant 0.000000e+00 : f32
    %185 = vector.broadcast %cst_40 : f32 to vector<1x32xf32>
    %cst_41 = arith.constant dense<0.000000e+00> : vector<1x128xf32>
    %186 = tpu.matmul %185, %184, %cst_41 {dimension_numbers = #tpu.dot_dimension_numbers<[1], [0], [0], [1], [0, 0, 1, 1], [], []>} : vector<1x32xf32>, vector<32x128xf32>, vector<1x128xf32> -> vector<1x128xf32>
    %187 = vector.extract_strided_slice %183 {offsets = [0, 0], sizes = [1, 128], strides = [1, 1]} : vector<8x128xf32> to vector<1x128xf32>
    %188 = arith.addf %187, %186 : vector<1x128xf32>
    %189 = arith.negf %188 : vector<1x128xf32>
    %190 = math.exp %189 : vector<1x128xf32>
    %cst_42 = arith.constant 1.000000e+00 : f32
    %191 = vector.broadcast %cst_42 : f32 to vector<1x128xf32>
    %192 = arith.addf %191, %190 : vector<1x128xf32>
    %193 = arith.divf %191, %192 : vector<1x128xf32>
    %194 = vector.extract_strided_slice %193 {offsets = [0, 0], sizes = [1, 32], strides = [1, 1]} : vector<1x128xf32> to vector<1x32xf32>
    %195 = vector.extract_strided_slice %193 {offsets = [0, 32], sizes = [1, 32], strides = [1, 1]} : vector<1x128xf32> to vector<1x32xf32>
    %196 = vector.extract_strided_slice %187 {offsets = [0, 64], sizes = [1, 32], strides = [1, 1]} : vector<1x128xf32> to vector<1x32xf32>
    %197 = vector.extract_strided_slice %186 {offsets = [0, 64], sizes = [1, 32], strides = [1, 1]} : vector<1x128xf32> to vector<1x32xf32>
    %198 = arith.addf %197, %180 : vector<1x32xf32>
    %199 = arith.mulf %194, %198 : vector<1x32xf32>
    %200 = arith.addf %196, %199 : vector<1x32xf32>
    %201 = math.tanh %200 : vector<1x32xf32>
    %cst_43 = arith.constant 1.000000e+00 : f32
    %202 = vector.broadcast %cst_43 : f32 to vector<1x32xf32>
    %203 = arith.subf %202, %195 : vector<1x32xf32>
    %204 = arith.mulf %203, %201 : vector<1x32xf32>
    %205 = arith.mulf %195, %185 : vector<1x32xf32>
    %206 = arith.addf %204, %205 : vector<1x32xf32>
    %cst_44 = arith.constant dense<0.000000e+00> : vector<1x128xf32>
    %207 = tpu.matmul %206, %184, %cst_44 {dimension_numbers = #tpu.dot_dimension_numbers<[1], [0], [0], [1], [0, 0, 1, 1], [], []>} : vector<1x32xf32>, vector<32x128xf32>, vector<1x128xf32> -> vector<1x128xf32>
    %208 = vector.extract_strided_slice %183 {offsets = [1, 0], sizes = [1, 128], strides = [1, 1]} : vector<8x128xf32> to vector<1x128xf32>
    %209 = arith.addf %208, %207 : vector<1x128xf32>
    %210 = arith.negf %209 : vector<1x128xf32>
    %211 = math.exp %210 : vector<1x128xf32>
    %cst_45 = arith.constant 1.000000e+00 : f32
    %212 = vector.broadcast %cst_45 : f32 to vector<1x128xf32>
    %213 = arith.addf %212, %211 : vector<1x128xf32>
    %214 = arith.divf %212, %213 : vector<1x128xf32>
    %215 = vector.extract_strided_slice %214 {offsets = [0, 0], sizes = [1, 32], strides = [1, 1]} : vector<1x128xf32> to vector<1x32xf32>
    %216 = vector.extract_strided_slice %214 {offsets = [0, 32], sizes = [1, 32], strides = [1, 1]} : vector<1x128xf32> to vector<1x32xf32>
    %217 = vector.extract_strided_slice %208 {offsets = [0, 64], sizes = [1, 32], strides = [1, 1]} : vector<1x128xf32> to vector<1x32xf32>
    %218 = vector.extract_strided_slice %207 {offsets = [0, 64], sizes = [1, 32], strides = [1, 1]} : vector<1x128xf32> to vector<1x32xf32>
    %219 = arith.addf %218, %180 : vector<1x32xf32>
    %220 = arith.mulf %215, %219 : vector<1x32xf32>
    %221 = arith.addf %217, %220 : vector<1x32xf32>
    %222 = math.tanh %221 : vector<1x32xf32>
    %cst_46 = arith.constant 1.000000e+00 : f32
    %223 = vector.broadcast %cst_46 : f32 to vector<1x32xf32>
    %224 = arith.subf %223, %216 : vector<1x32xf32>
    %225 = arith.mulf %224, %222 : vector<1x32xf32>
    %226 = arith.mulf %216, %206 : vector<1x32xf32>
    %227 = arith.addf %225, %226 : vector<1x32xf32>
    %cst_47 = arith.constant dense<0.000000e+00> : vector<1x128xf32>
    %228 = tpu.matmul %227, %184, %cst_47 {dimension_numbers = #tpu.dot_dimension_numbers<[1], [0], [0], [1], [0, 0, 1, 1], [], []>} : vector<1x32xf32>, vector<32x128xf32>, vector<1x128xf32> -> vector<1x128xf32>
    %229 = vector.extract_strided_slice %183 {offsets = [2, 0], sizes = [1, 128], strides = [1, 1]} : vector<8x128xf32> to vector<1x128xf32>
    %230 = arith.addf %229, %228 : vector<1x128xf32>
    %231 = arith.negf %230 : vector<1x128xf32>
    %232 = math.exp %231 : vector<1x128xf32>
    %cst_48 = arith.constant 1.000000e+00 : f32
    %233 = vector.broadcast %cst_48 : f32 to vector<1x128xf32>
    %234 = arith.addf %233, %232 : vector<1x128xf32>
    %235 = arith.divf %233, %234 : vector<1x128xf32>
    %236 = vector.extract_strided_slice %235 {offsets = [0, 0], sizes = [1, 32], strides = [1, 1]} : vector<1x128xf32> to vector<1x32xf32>
    %237 = vector.extract_strided_slice %235 {offsets = [0, 32], sizes = [1, 32], strides = [1, 1]} : vector<1x128xf32> to vector<1x32xf32>
    %238 = vector.extract_strided_slice %229 {offsets = [0, 64], sizes = [1, 32], strides = [1, 1]} : vector<1x128xf32> to vector<1x32xf32>
    %239 = vector.extract_strided_slice %228 {offsets = [0, 64], sizes = [1, 32], strides = [1, 1]} : vector<1x128xf32> to vector<1x32xf32>
    %240 = arith.addf %239, %180 : vector<1x32xf32>
    %241 = arith.mulf %236, %240 : vector<1x32xf32>
    %242 = arith.addf %238, %241 : vector<1x32xf32>
    %243 = math.tanh %242 : vector<1x32xf32>
    %cst_49 = arith.constant 1.000000e+00 : f32
    %244 = vector.broadcast %cst_49 : f32 to vector<1x32xf32>
    %245 = arith.subf %244, %237 : vector<1x32xf32>
    %246 = arith.mulf %245, %243 : vector<1x32xf32>
    %247 = arith.mulf %237, %227 : vector<1x32xf32>
    %248 = arith.addf %246, %247 : vector<1x32xf32>
    %cst_50 = arith.constant dense<0.000000e+00> : vector<1x128xf32>
    %249 = tpu.matmul %248, %184, %cst_50 {dimension_numbers = #tpu.dot_dimension_numbers<[1], [0], [0], [1], [0, 0, 1, 1], [], []>} : vector<1x32xf32>, vector<32x128xf32>, vector<1x128xf32> -> vector<1x128xf32>
    %250 = vector.extract_strided_slice %183 {offsets = [3, 0], sizes = [1, 128], strides = [1, 1]} : vector<8x128xf32> to vector<1x128xf32>
    %251 = arith.addf %250, %249 : vector<1x128xf32>
    %252 = arith.negf %251 : vector<1x128xf32>
    %253 = math.exp %252 : vector<1x128xf32>
    %cst_51 = arith.constant 1.000000e+00 : f32
    %254 = vector.broadcast %cst_51 : f32 to vector<1x128xf32>
    %255 = arith.addf %254, %253 : vector<1x128xf32>
    %256 = arith.divf %254, %255 : vector<1x128xf32>
    %257 = vector.extract_strided_slice %256 {offsets = [0, 0], sizes = [1, 32], strides = [1, 1]} : vector<1x128xf32> to vector<1x32xf32>
    %258 = vector.extract_strided_slice %256 {offsets = [0, 32], sizes = [1, 32], strides = [1, 1]} : vector<1x128xf32> to vector<1x32xf32>
    %259 = vector.extract_strided_slice %250 {offsets = [0, 64], sizes = [1, 32], strides = [1, 1]} : vector<1x128xf32> to vector<1x32xf32>
    %260 = vector.extract_strided_slice %249 {offsets = [0, 64], sizes = [1, 32], strides = [1, 1]} : vector<1x128xf32> to vector<1x32xf32>
    %261 = arith.addf %260, %180 : vector<1x32xf32>
    %262 = arith.mulf %257, %261 : vector<1x32xf32>
    %263 = arith.addf %259, %262 : vector<1x32xf32>
    %264 = math.tanh %263 : vector<1x32xf32>
    %cst_52 = arith.constant 1.000000e+00 : f32
    %265 = vector.broadcast %cst_52 : f32 to vector<1x32xf32>
    %266 = arith.subf %265, %258 : vector<1x32xf32>
    %267 = arith.mulf %266, %264 : vector<1x32xf32>
    %268 = arith.mulf %258, %248 : vector<1x32xf32>
    %269 = arith.addf %267, %268 : vector<1x32xf32>
    %cst_53 = arith.constant dense<0.000000e+00> : vector<1x128xf32>
    %270 = tpu.matmul %269, %184, %cst_53 {dimension_numbers = #tpu.dot_dimension_numbers<[1], [0], [0], [1], [0, 0, 1, 1], [], []>} : vector<1x32xf32>, vector<32x128xf32>, vector<1x128xf32> -> vector<1x128xf32>
    %271 = vector.extract_strided_slice %183 {offsets = [4, 0], sizes = [1, 128], strides = [1, 1]} : vector<8x128xf32> to vector<1x128xf32>
    %272 = arith.addf %271, %270 : vector<1x128xf32>
    %273 = arith.negf %272 : vector<1x128xf32>
    %274 = math.exp %273 : vector<1x128xf32>
    %cst_54 = arith.constant 1.000000e+00 : f32
    %275 = vector.broadcast %cst_54 : f32 to vector<1x128xf32>
    %276 = arith.addf %275, %274 : vector<1x128xf32>
    %277 = arith.divf %275, %276 : vector<1x128xf32>
    %278 = vector.extract_strided_slice %277 {offsets = [0, 0], sizes = [1, 32], strides = [1, 1]} : vector<1x128xf32> to vector<1x32xf32>
    %279 = vector.extract_strided_slice %277 {offsets = [0, 32], sizes = [1, 32], strides = [1, 1]} : vector<1x128xf32> to vector<1x32xf32>
    %280 = vector.extract_strided_slice %271 {offsets = [0, 64], sizes = [1, 32], strides = [1, 1]} : vector<1x128xf32> to vector<1x32xf32>
    %281 = vector.extract_strided_slice %270 {offsets = [0, 64], sizes = [1, 32], strides = [1, 1]} : vector<1x128xf32> to vector<1x32xf32>
    %282 = arith.addf %281, %180 : vector<1x32xf32>
    %283 = arith.mulf %278, %282 : vector<1x32xf32>
    %284 = arith.addf %280, %283 : vector<1x32xf32>
    %285 = math.tanh %284 : vector<1x32xf32>
    %cst_55 = arith.constant 1.000000e+00 : f32
    %286 = vector.broadcast %cst_55 : f32 to vector<1x32xf32>
    %287 = arith.subf %286, %279 : vector<1x32xf32>
    %288 = arith.mulf %287, %285 : vector<1x32xf32>
    %289 = arith.mulf %279, %269 : vector<1x32xf32>
    %290 = arith.addf %288, %289 : vector<1x32xf32>
    %cst_56 = arith.constant dense<0.000000e+00> : vector<1x128xf32>
    %291 = tpu.matmul %290, %184, %cst_56 {dimension_numbers = #tpu.dot_dimension_numbers<[1], [0], [0], [1], [0, 0, 1, 1], [], []>} : vector<1x32xf32>, vector<32x128xf32>, vector<1x128xf32> -> vector<1x128xf32>
    %292 = vector.extract_strided_slice %183 {offsets = [5, 0], sizes = [1, 128], strides = [1, 1]} : vector<8x128xf32> to vector<1x128xf32>
    %293 = arith.addf %292, %291 : vector<1x128xf32>
    %294 = arith.negf %293 : vector<1x128xf32>
    %295 = math.exp %294 : vector<1x128xf32>
    %cst_57 = arith.constant 1.000000e+00 : f32
    %296 = vector.broadcast %cst_57 : f32 to vector<1x128xf32>
    %297 = arith.addf %296, %295 : vector<1x128xf32>
    %298 = arith.divf %296, %297 : vector<1x128xf32>
    %299 = vector.extract_strided_slice %298 {offsets = [0, 0], sizes = [1, 32], strides = [1, 1]} : vector<1x128xf32> to vector<1x32xf32>
    %300 = vector.extract_strided_slice %298 {offsets = [0, 32], sizes = [1, 32], strides = [1, 1]} : vector<1x128xf32> to vector<1x32xf32>
    %301 = vector.extract_strided_slice %292 {offsets = [0, 64], sizes = [1, 32], strides = [1, 1]} : vector<1x128xf32> to vector<1x32xf32>
    %302 = vector.extract_strided_slice %291 {offsets = [0, 64], sizes = [1, 32], strides = [1, 1]} : vector<1x128xf32> to vector<1x32xf32>
    %303 = arith.addf %302, %180 : vector<1x32xf32>
    %304 = arith.mulf %299, %303 : vector<1x32xf32>
    %305 = arith.addf %301, %304 : vector<1x32xf32>
    %306 = math.tanh %305 : vector<1x32xf32>
    %cst_58 = arith.constant 1.000000e+00 : f32
    %307 = vector.broadcast %cst_58 : f32 to vector<1x32xf32>
    %308 = arith.subf %307, %300 : vector<1x32xf32>
    %309 = arith.mulf %308, %306 : vector<1x32xf32>
    %310 = arith.mulf %300, %290 : vector<1x32xf32>
    %311 = arith.addf %309, %310 : vector<1x32xf32>
    %cst_59 = arith.constant dense<0.000000e+00> : vector<1x128xf32>
    %312 = tpu.matmul %311, %184, %cst_59 {dimension_numbers = #tpu.dot_dimension_numbers<[1], [0], [0], [1], [0, 0, 1, 1], [], []>} : vector<1x32xf32>, vector<32x128xf32>, vector<1x128xf32> -> vector<1x128xf32>
    %313 = vector.extract_strided_slice %183 {offsets = [6, 0], sizes = [1, 128], strides = [1, 1]} : vector<8x128xf32> to vector<1x128xf32>
    %314 = arith.addf %313, %312 : vector<1x128xf32>
    %315 = arith.negf %314 : vector<1x128xf32>
    %316 = math.exp %315 : vector<1x128xf32>
    %cst_60 = arith.constant 1.000000e+00 : f32
    %317 = vector.broadcast %cst_60 : f32 to vector<1x128xf32>
    %318 = arith.addf %317, %316 : vector<1x128xf32>
    %319 = arith.divf %317, %318 : vector<1x128xf32>
    %320 = vector.extract_strided_slice %319 {offsets = [0, 0], sizes = [1, 32], strides = [1, 1]} : vector<1x128xf32> to vector<1x32xf32>
    %321 = vector.extract_strided_slice %319 {offsets = [0, 32], sizes = [1, 32], strides = [1, 1]} : vector<1x128xf32> to vector<1x32xf32>
    %322 = vector.extract_strided_slice %313 {offsets = [0, 64], sizes = [1, 32], strides = [1, 1]} : vector<1x128xf32> to vector<1x32xf32>
    %323 = vector.extract_strided_slice %312 {offsets = [0, 64], sizes = [1, 32], strides = [1, 1]} : vector<1x128xf32> to vector<1x32xf32>
    %324 = arith.addf %323, %180 : vector<1x32xf32>
    %325 = arith.mulf %320, %324 : vector<1x32xf32>
    %326 = arith.addf %322, %325 : vector<1x32xf32>
    %327 = math.tanh %326 : vector<1x32xf32>
    %cst_61 = arith.constant 1.000000e+00 : f32
    %328 = vector.broadcast %cst_61 : f32 to vector<1x32xf32>
    %329 = arith.subf %328, %321 : vector<1x32xf32>
    %330 = arith.mulf %329, %327 : vector<1x32xf32>
    %331 = arith.mulf %321, %311 : vector<1x32xf32>
    %332 = arith.addf %330, %331 : vector<1x32xf32>
    %cst_62 = arith.constant dense<0.000000e+00> : vector<1x128xf32>
    %333 = tpu.matmul %332, %184, %cst_62 {dimension_numbers = #tpu.dot_dimension_numbers<[1], [0], [0], [1], [0, 0, 1, 1], [], []>} : vector<1x32xf32>, vector<32x128xf32>, vector<1x128xf32> -> vector<1x128xf32>
    %334 = vector.extract_strided_slice %183 {offsets = [7, 0], sizes = [1, 128], strides = [1, 1]} : vector<8x128xf32> to vector<1x128xf32>
    %335 = arith.addf %334, %333 : vector<1x128xf32>
    %336 = arith.negf %335 : vector<1x128xf32>
    %337 = math.exp %336 : vector<1x128xf32>
    %cst_63 = arith.constant 1.000000e+00 : f32
    %338 = vector.broadcast %cst_63 : f32 to vector<1x128xf32>
    %339 = arith.addf %338, %337 : vector<1x128xf32>
    %340 = arith.divf %338, %339 : vector<1x128xf32>
    %341 = vector.extract_strided_slice %340 {offsets = [0, 0], sizes = [1, 32], strides = [1, 1]} : vector<1x128xf32> to vector<1x32xf32>
    %342 = vector.extract_strided_slice %340 {offsets = [0, 32], sizes = [1, 32], strides = [1, 1]} : vector<1x128xf32> to vector<1x32xf32>
    %343 = vector.extract_strided_slice %334 {offsets = [0, 64], sizes = [1, 32], strides = [1, 1]} : vector<1x128xf32> to vector<1x32xf32>
    %344 = vector.extract_strided_slice %333 {offsets = [0, 64], sizes = [1, 32], strides = [1, 1]} : vector<1x128xf32> to vector<1x32xf32>
    %345 = arith.addf %344, %180 : vector<1x32xf32>
    %346 = arith.mulf %341, %345 : vector<1x32xf32>
    %347 = arith.addf %343, %346 : vector<1x32xf32>
    %348 = math.tanh %347 : vector<1x32xf32>
    %cst_64 = arith.constant 1.000000e+00 : f32
    %349 = vector.broadcast %cst_64 : f32 to vector<1x32xf32>
    %350 = arith.subf %349, %342 : vector<1x32xf32>
    %351 = arith.mulf %350, %348 : vector<1x32xf32>
    %352 = arith.mulf %342, %332 : vector<1x32xf32>
    %353 = arith.addf %351, %352 : vector<1x32xf32>
    %354 = tpu.concatenate %206, %227, %248, %269, %290, %311, %332, %353 in 0 : vector<1x32xf32>, vector<1x32xf32>, vector<1x32xf32>, vector<1x32xf32>, vector<1x32xf32>, vector<1x32xf32>, vector<1x32xf32>, vector<1x32xf32> -> vector<8x32xf32>
    %c0_65 = arith.constant 0 : index
    %c0_66 = arith.constant 0 : index
    %355 = vector.load %arg4[%c0_65, %c0_66] : memref<32x128xf32, #tpu.memory_space<vmem>>, vector<32x128xf32>
    %cst_67 = arith.constant dense<0.000000e+00> : vector<8x128xf32>
    %356 = tpu.matmul %354, %355, %cst_67 {dimension_numbers = #tpu.dot_dimension_numbers<[1], [0], [0], [1], [0, 0, 1, 1], [], []>} : vector<8x32xf32>, vector<32x128xf32>, vector<8x128xf32> -> vector<8x128xf32>
    %c2 = arith.constant 2 : index
    %c0_68 = arith.constant 0 : index
    %357 = vector.load %arg3[%c2, %c0_68] : memref<3x256xf32, #tpu.memory_space<vmem>>, vector<1x128xf32>
    %358 = vector.broadcast %357 : vector<1x128xf32> to vector<8x128xf32>
    %359 = arith.addf %356, %358 : vector<8x128xf32>
    %cst_69 = arith.constant dense<0xFF800000> : vector<8xf32>
    %360 = vector.multi_reduction <maximumf>, %359, %cst_69 [1] : vector<8x128xf32> to vector<8xf32>
    %361 = vector.shape_cast %360 : vector<8xf32> to vector<8x1xf32>
    %362 = vector.broadcast %361 : vector<8x1xf32> to vector<8x128xf32>
    %363 = arith.subf %359, %362 : vector<8x128xf32>
    %364 = math.exp %363 : vector<8x128xf32>
    %cst_70 = arith.constant dense<0.000000e+00> : vector<8xf32>
    %365 = vector.multi_reduction <add>, %364, %cst_70 [1] : vector<8x128xf32> to vector<8xf32>
    %366 = vector.shape_cast %365 : vector<8xf32> to vector<8x1xf32>
    %367 = vector.broadcast %366 : vector<8x1xf32> to vector<8x128xf32>
    %368 = arith.divf %364, %367 : vector<8x128xf32>
    %369 = vector.broadcast %361 : vector<8x1xf32> to vector<8x128xf32>
    %370 = arith.subf %359, %369 : vector<8x128xf32>
    %371 = math.log %366 : vector<8x1xf32>
    %372 = vector.broadcast %371 : vector<8x1xf32> to vector<8x128xf32>
    %373 = arith.subf %370, %372 : vector<8x128xf32>
    %374 = tpu.concatenate %368, %373 in 1 : vector<8x128xf32>, vector<8x128xf32> -> vector<8x256xf32>
    %c0_71 = arith.constant 0 : index
    %c0_72 = arith.constant 0 : index
    %375 = vector.load %arg5[%c0_71, %c0_72] : memref<8x256xf32, #tpu.memory_space<vmem>>, vector<8x256xf32>
    tpu.vector_store %arg5[%c0_71, %c0_72], %374 {strides = array<i32>} : memref<8x256xf32, #tpu.memory_space<vmem>>, vector<8x256xf32>,
    %376 = tpu.concatenate %176, %353 in 0 : vector<1x32xf32>, vector<1x32xf32> -> vector<2x32xf32>
    %c0_73 = arith.constant 0 : index
    %c0_74 = arith.constant 0 : index
    %377 = vector.load %arg6[%c0_73, %c0_74] : memref<2x32xf32, #tpu.memory_space<vmem>>, vector<2x32xf32>
    tpu.vector_store %arg6[%c0_73, %c0_74], %376 {strides = array<i32>} : memref<2x32xf32, #tpu.memory_space<vmem>>, vector<2x32xf32>,
    return
  }
}

</mosaic_0001>

<bundles_post_ra>
// kernel: tpu_custom_call.1
= control target key start
LH: loop header
LB: loop body
LE: loop exit
PB: predicated region body
PF: predicated region fallthrough
CT: control target
= control target key end

     0   :  { %12 = vsyncpa [#allocation3], 0  ;;  %s3224_s0 = inlined_call_operand.hbm [shape: f32[8,32], index: 0, kind: input, shape index: {}]   ;;  %s3225_s1 = inlined_call_operand.hbm [shape: f32[64,128], index: 1, kind: input, shape index: {}]   ;;  %s3226_s2 = inlined_call_operand.hbm [shape: f32[64,128], index: 2, kind: input, shape index: {}]   ;;  %s3227_s3 = inlined_call_operand.hbm [shape: f32[3,256], index: 3, kind: input, shape index: {}]   ;;  %s3228_s4 = inlined_call_operand.hbm [shape: f32[32,128], index: 4, kind: input, shape index: {}]   ;;  %s3229_s5 = inlined_call_operand.hbm [shape: f32[8,256], index: 5, kind: output, shape index: {0}]   ;;  %s3230_s6 = inlined_call_operand.hbm [shape: f32[2,32], index: 6, kind: output, shape index: {1}]  }
   0x1   :  { %13 = vsyncpa [#allocation6], 0 }
   0x2   :  { %14 = vsyncpa [#allocation9], 0 }
   0x3   :  { %15 = vsyncpa [#allocation4], 0 }
   0x4   :  { %16 = vsyncpa [#allocation13], 0  ;;  %s2773_s21 = smov [#allocation5]  }
   0x5   :  { %s32_s22 = sshll.u32 %s2773_s21, 4  ;;  %s33_s22 = int_to_ptr.vmem [resolvable:$true] %s32_s22 }
   0x6   :  { %s2631_s23 = scalar_lea.vmem %s33_s22, 1024  ;;  %p2636_p1 = scmp.lt.s32.totalorder %s33_s22, %s33_s22 }
   0x7   :  { %p2632_p0 = scmp.ne.s32.totalorder %s33_s22, %s2631_s23  ;;  %p2637_p2 = scmp.lt.s32.totalorder %s2631_s23, %s2631_s23 }
   0x9   :  { %p2638_p3 = por %p2637_p2, %p2636_p1 }
   0xb   :  { %p2639_p4 = pnand %p2638_p3, %p2632_p0 }
   0xd   :  { %2642 = shalt.err (!%p2639_p4)
}
   0xe   :  { %s2774_s24 = smov 128   ;;  %s2775_s25 = smov 8  }
   0xf   :  { %38 = dma.hbm_to_vmem [thread:$0]  %s3225_s1, 1024, %s33_s22, [#allocation6], %s2774_s24, %s2774_s24, %s2775_s25  }
  0x10   :  { %s2776_s28 = smov [#allocation8]   ;;  %s2777_s30 = smov [#allocation2]  }
  0x11   :  { %s57_s29 = sshll.u32 %s2776_s28, 4  ;;  %s23_s7 = sshll.u32 %s2777_s30, 4  ;;  %s58_s29 = int_to_ptr.vmem [resolvable:$true] %s57_s29  ;;  %s24_s7 = int_to_ptr.vmem [resolvable:$true] %s23_s7 }
  0x12   :  { %s2651_s8 = scalar_lea.vmem %s58_s29, 128  ;;  %p2656_p6 = scmp.lt.s32.totalorder %s58_s29, %s58_s29 }
  0x13   :  { %p2652_p5 = scmp.ne.s32.totalorder %s58_s29, %s2651_s8  ;;  %p2657_p7 = scmp.lt.s32.totalorder %s2651_s8, %s2651_s8 }
  0x15   :  { %p2658_p8 = por %p2657_p7, %p2656_p6 }
  0x17   :  { %p2659_p9 = pnand %p2658_p8, %p2652_p5 }
  0x19   :  { %2662 = shalt.err (!%p2659_p9)
}
  0x1a   :  { %60 = dma.hbm_to_vmem [thread:$0]  %s3227_s3, 128, %s58_s29, [#allocation9]  }
  0x1b   :  { %s2671_s11 = scalar_lea.vmem %s24_s7, 128  ;;  %p2676_p11 = scmp.lt.s32.totalorder %s24_s7, %s24_s7 }
  0x1c   :  { %p2672_p10 = scmp.ne.s32.totalorder %s24_s7, %s2671_s11  ;;  %p2677_p12 = scmp.lt.s32.totalorder %s2671_s11, %s2671_s11 }
  0x1e   :  { %p2678_p13 = por %p2677_p12, %p2676_p11 }
  0x20   :  { %p2679_p0 = pnand %p2678_p13, %p2672_p10 }
  0x22   :  { %2682 = shalt.err (!%p2679_p0)
}
  0x23   :  { %26 = dma.hbm_to_vmem [thread:$0]  %s3224_s0, 128, %s24_s7, [#allocation3]  }
  0x24   :  { %s2778_s13 = smov [#allocation7]   ;;  %s2779_s15 = smov [#allocation10]  }
  0x25   :  { %s44_s14 = sshll.u32 %s2778_s13, 4  ;;  %s66_s16 = sshll.u32 %s2779_s15, 4  ;;  %s45_s14 = int_to_ptr.vmem [resolvable:$true] %s44_s14  ;;  %s67_s16 = int_to_ptr.vmem [resolvable:$true] %s66_s16 }
  0x26   :  { %s2691_s17 = scalar_lea.vmem %s45_s14, 1024  ;;  %p2696_p2 = scmp.lt.s32.totalorder %s45_s14, %s45_s14 }
  0x27   :  { %p2692_p1 = scmp.ne.s32.totalorder %s45_s14, %s2691_s17  ;;  %p2697_p3 = scmp.lt.s32.totalorder %s2691_s17, %s2691_s17 }
  0x29   :  { %p2698_p4 = por %p2697_p3, %p2696_p2 }
  0x2b   :  { %p2699_p5 = pnand %p2698_p4, %p2692_p1 }
  0x2d   :  { %2702 = shalt.err (!%p2699_p5)
}
  0x2e   :  { %50 = dma.hbm_to_vmem [thread:$0]  %s3226_s2, 1024, %s45_s14, [#allocation6], %s2774_s24, %s2774_s24, %s2775_s25  }
  0x2f   :  { %s2711_s0 = scalar_lea.vmem %s67_s16, 512  ;;  %p2716_p7 = scmp.lt.s32.totalorder %s67_s16, %s67_s16 }
  0x30   :  { %p2712_p6 = scmp.ne.s32.totalorder %s67_s16, %s2711_s0  ;;  %p2717_p8 = scmp.lt.s32.totalorder %s2711_s0, %s2711_s0 }
  0x32   :  { %p2718_p9 = por %p2717_p8, %p2716_p7 }
  0x34   :  { %p2719_p10 = pnand %p2718_p9, %p2712_p6 }
  0x36   :  { %2722 = shalt.err (!%p2719_p10)
}
  0x37   :  { %72 = dma.hbm_to_vmem [thread:$0]  %s3228_s4, 512, %s67_s16, [#allocation9], %s2774_s24, %s2774_s24, %s2775_s25  }
  0x38   :  { %2763 = dma.done.wait [#allocation3], 128  }
  0x39   :  { %2764 = vsyncadd [#allocation3], 4294967168 }
  0x3a   :  { %2765 = dma.done.wait [#allocation6], 2048  }
  0x3b   :  { %2766 = vsyncadd [#allocation6], 4294965248 }
  0x3c   :  { %2767 = dma.done.wait [#allocation9], 640  }
  0x3d   :  { %2768 = vsyncadd [#allocation9], 4294966656  ;;  %v2780_v0 = vmov 0.0   ;;  %vm2781_vm0 = vmmov 0   ;;  %v92_v1 = vld [vmem:[#allocation5 + $0x18] sm:$0xff]  ;;  %v91_v3 = vld [vmem:[#allocation5 + $0x10] sm:$0xff] }
  0x3e   :  { %2299 = vmatprep.subr.mxu0 %v2780_v0  ;;  %2310 = vmatprep.subr.mxu1 %v2780_v0  ;;  %v2851_v2 = vld [vmem:[#allocation7 + $0x18] sm:$0xff]  ;;  %v2854_v4 = vld [vmem:[#allocation7 + $0x10] sm:$0xff]  ;;  %v90_v5 = vld [vmem:[#allocation5 + $0x8] sm:$0xff]  ;;  %vm99_vm1 = vcmask 261120   ;;  %s2782_s2 = smov 64   ;;  %s2783_s4 = smov 96  }
  0x3f   :  { %2307 = vmatprep.mubr.msk.f32.mxu0 %vm2781_vm0, %v2780_v0  ;;  %2318 = vmatprep.mubr.msk.f32.mxu1 %vm2781_vm0, %v2780_v0  ;;  %v2858_v6 = vld [vmem:[#allocation7 + $0x8] sm:$0xff]  ;;  %v89_v7 = vld [vmem:[#allocation5] sm:$0xff]  ;;  %v88_v9 = vld [vmem:[#allocation2] sm:$0xff]  ;;  %vm1047_vm2 = vcmask 1040384   ;;  %vm1049_vm3 = vcmask 1041408   ;;  %vm1051_vm4 = vcmask 1042432  }
  0x40   :  { %2300 = vmatpush3.msra.mxu0 %v92_v1  ;;  %2311 = vmatpush3.msra.mxu1 %v2851_v2  ;;  %v2863_v8 = vld [vmem:[#allocation7] sm:$0xff]  ;;  %vm1053_vm5 = vcmask 1043456   ;;  %vm1055_vm6 = vcmask 1044480   ;;  %vm1057_vm7 = vcmask 1045504   ;;  %vm1059_vm8 = vcmask 1046528   ;;  %s2784_s21 = smov [#allocation12]  }
  0x41   :  { %2301 = vmatprep.subr.mxu0 %v2780_v0  ;;  %2312 = vmatprep.subr.mxu1 %v2780_v0  ;;  %v2169_v10 = vld [vmem:[#allocation8 + $0x4] ss:$0 sm:$0xff]  ;;  %v2166_v17 = vld [vmem:[#allocation8] ss:$0 sm:$0xff]  ;;  %vm2133_vm9 = vcmask 254976   ;;  %s2151_s22 = sshll.u32 %s2784_s21, 4  ;;  %s2152_s22 = int_to_ptr.vmem [resolvable:$true] %s2151_s22 }
  0x42   :  { %2302 = vmatpush3.msra.mxu0 %v91_v3  ;;  %2313 = vmatpush3.msra.mxu1 %v2854_v4  ;;  %s2723_s23 = scalar_lea.vmem %s2152_s22, 32  ;;  %p2728_p12 = scmp.lt.s32.totalorder %s2152_s22, %s2152_s22 }
  0x43   :  { %2303 = vmatprep.subr.mxu0 %v2780_v0  ;;  %2314 = vmatprep.subr.mxu1 %v2780_v0  ;;  %p2724_p11 = scmp.ne.s32.totalorder %s2152_s22, %s2723_s23  ;;  %p2729_p13 = scmp.lt.s32.totalorder %s2723_s23, %s2723_s23 }
  0x44   :  { %2304 = vmatpush3.msra.mxu0 %v90_v5  ;;  %2315 = vmatpush3.msra.mxu1 %v2858_v6 }
  0x45   :  { %2305 = vmatprep.subr.mxu0 %v2780_v0  ;;  %2316 = vmatprep.subr.mxu1 %v2780_v0  ;;  %p2730_p0 = por %p2729_p13, %p2728_p12 }
  0x46   :  { %2306 = vmatpush3.msra.mxu0 %v89_v7  ;;  %2317 = vmatpush3.msra.mxu1 %v2863_v8 }
  0x47   :  { %2308 = vmatmul.mubr.msk.f32.vlgmr.msra.gmra.mxu0 %vm99_vm1, %v88_v9  ;;  %2319 = vmatmul.mubr.f32.vlgmr.msra.gmra.mxu1 %v2780_v0  ;;  %p2731_p1 = pnand %p2730_p0, %p2724_p11 }
  0x48   :  { %262 = vrot.lane.b32.xlu0 %v2169_v10, %s2782_s2  ;;  %2321 = vmatprep.subr.mxu0 %v2780_v0 }
  0x49   :  { %2322 = vmatpush3.msra.mxu0 %v2851_v2  ;;  %2329 = vmatprep.mubr.msk.f32.mxu0 %vm2781_vm0, %v2780_v0 }
  0x4a   :  { %2323 = vmatprep.subr.mxu0 %v2780_v0  ;;  %2332 = vmatprep.subr.mxu1 %v2780_v0 }
  0x4b   :  { %2324 = vmatpush3.msra.mxu0 %v2854_v4  ;;  %2333 = vmatpush3.msra.mxu1 %v2851_v2 }
  0x4c   :  { %2325 = vmatprep.subr.mxu0 %v2780_v0  ;;  %2334 = vmatprep.subr.mxu1 %v2780_v0 }
  0x4d   :  { %2326 = vmatpush3.msra.mxu0 %v2858_v6  ;;  %2335 = vmatpush3.msra.mxu1 %v2854_v4 }
  0x4e   :  { %2327 = vmatprep.subr.mxu0 %v2780_v0  ;;  %2336 = vmatprep.subr.mxu1 %v2780_v0 }
  0x4f   :  { %2328 = vmatpush3.msra.mxu0 %v2863_v8  ;;  %2337 = vmatpush3.msra.mxu1 %v2858_v6 }
  0x50   :  { %2338 = vmatprep.subr.mxu1 %v2780_v0  ;;  %2340 = vmatprep.mubr.msk.f32.mxu1 %vm2781_vm0, %v2780_v0 }
  0x51   :  { %2339 = vmatpush3.msra.mxu1 %v2863_v8  ;;  %2343 = vmatprep.subr.mxu0 %v2780_v0 }
  0x52   :  { %2354 = vmatprep.subr.mxu1 %v2780_v0 }
  0xba   :  { %v2894_v11 = vpop.permute.xlu0 %262 }
 0x107   :  { %v246_v12 = vpop.f32.mrf.mxu1  ;;  %v169_v13 = vpop.f32.mrf.mxu0 }
 0x108   :  { %v265_v14 = vadd.f32 %v2894_v11, %v246_v12  ;;  %v2898_v18 = vadd.f32 %v2166_v17, %v169_v13 }
 0x109   :  { %v2320_v15 = vpop.f32.mrf.mxu1  ;;  %v2309_v16 = vpop.f32.mrf.mxu0 }
 0x10a   :  { %267 = vrot.lane.b32.xlu0 %v265_v14, %s2782_s2  ;;  %v250_v19 = vadd.f32 %v246_v12, %v2898_v18 }
 0x10c   :  { %v2168_v20 = vmul.f32 -1.442695, %v250_v19 }
 0x10e   :  { %2521 = vpow2.f32 %v2168_v20 }
 0x11b   :  { %v2522_v21 = vpop.eup %2521 }
 0x11c   :  { %v254_v22 = vadd.f32 1.0, %v2522_v21 }
 0x11e   :  { %2523 = vrcp.f32 %v254_v22 }
 0x12b   :  { %v2524_v23 = vpop.eup %2523 }
 0x12c   :  { %v277_v29 = vsub.f32 1.0, %v2524_v23  ;;  %v283_v31 = vmul.f32 0.0, %v2524_v23 }
 0x17c   :  { %v268_v24 = vpop.permute.xlu0 %267 }
 0x17d   :  { %v270_v25 = vmul.f32 %v2524_v23, %v268_v24 }
 0x17f   :  { %272 = vrot.lane.b32.xlu1 %v270_v25, %s2782_s2 }
 0x1f1   :  { %v273_v26 = vpop.permute.xlu1 %272 }
 0x1f2   :  { %v275_v27 = vadd.f32 %v273_v26, %v2898_v18 }
 0x1f4   :  { %2525 = vtanh.f32 %v275_v27 }
 0x201   :  { %v2526_v28 = vpop.eup %2525 }
 0x202   :  { %279 = vrot.lane.b32.xlu1 %v2526_v28, %s2783_s4 }
 0x274   :  { %v280_v30 = vpop.permute.xlu1 %279 }
 0x275   :  { %v282_v32 = vmul.f32 %v280_v30, %v277_v29 }
 0x277   :  { %v2904_v33 = vadd.f32 %v283_v31, %v282_v32 }
 0x279   :  { %286 = vrot.lane.b32.xlu0 %v2904_v33, %s2783_s4  ;;  %v389_v51 = vrot.slane %v2904_v33, 7 }
 0x2eb   :  { %v287_v34 = vpop.permute.xlu0 %286 }
 0x2ec   :  { %2330 = vmatmul.mubr.msk.f32.vlgmr.msra.gmra.mxu0 %vm99_vm1, %v287_v34 }
 0x2ed   :  { %2344 = vmatpush3.msra.mxu0 %v2851_v2  ;;  %2351 = vmatprep.mubr.msk.f32.mxu0 %vm2781_vm0, %v2780_v0 }
 0x2ee   :  { %2345 = vmatprep.subr.mxu0 %v2780_v0 }
 0x2ef   :  { %2346 = vmatpush3.msra.mxu0 %v2854_v4 }
 0x2f0   :  { %2347 = vmatprep.subr.mxu0 %v2780_v0 }
 0x2f1   :  { %2348 = vmatpush3.msra.mxu0 %v2858_v6 }
 0x2f2   :  { %2349 = vmatprep.subr.mxu0 %v2780_v0 }
 0x2f3   :  { %2350 = vmatpush3.msra.mxu0 %v2863_v8 }
 0x2f4   :  { %2365 = vmatprep.subr.mxu0 %v2780_v0 }
 0x3ac   :  { %v356_v35 = vpop.f32.mrf.mxu0 }
 0x3ad   :  { %v370_v36 = vadd.f32 %v356_v35, %v2894_v11  ;;  %v361_v39 = vrot.slane %v356_v35, 7 }
 0x3ae   :  { %v2331_v37 = vpop.f32.mrf.mxu0 }
 0x3af   :  { %v372_v38 = vrot.slane %v370_v36, 7  ;;  %v363_v40 = vadd.f32 %v361_v39, %v2898_v18 }
 0x3b1   :  { %373 = vrot.lane.b32.xlu1 %v372_v38, %s2782_s2  ;;  %v2171_v41 = vmul.f32 -1.442695, %v363_v40 }
 0x3b3   :  { %2527 = vpow2.f32 %v2171_v41 }
 0x3c0   :  { %v2528_v42 = vpop.eup %2527 }
 0x3c1   :  { %v367_v43 = vadd.f32 1.0, %v2528_v42 }
 0x3c3   :  { %2529 = vrcp.f32 %v367_v43 }
 0x3d0   :  { %v2530_v44 = vpop.eup %2529 }
 0x3d1   :  { %v383_v50 = vsub.f32 1.0, %v2530_v44  ;;  %v391_v53 = vmul.f32 %v2530_v44, %v389_v51 }
 0x423   :  { %v374_v45 = vpop.permute.xlu1 %373 }
 0x424   :  { %v376_v46 = vmul.f32 %v2530_v44, %v374_v45 }
 0x426   :  { %378 = vrot.lane.b32.xlu0 %v376_v46, %s2782_s2 }
 0x498   :  { %v379_v47 = vpop.permute.xlu0 %378 }
 0x499   :  { %v381_v48 = vadd.f32 %v379_v47, %v2898_v18 }
 0x49b   :  { %2531 = vtanh.f32 %v381_v48 }
 0x4a8   :  { %v2532_v49 = vpop.eup %2531 }
 0x4a9   :  { %385 = vrot.lane.b32.xlu1 %v2532_v49, %s2783_s4 }
 0x51b   :  { %v386_v52 = vpop.permute.xlu1 %385 }
 0x51c   :  { %v388_v54 = vmul.f32 %v386_v52, %v383_v50 }
 0x51e   :  { %v392_v55 = vadd.f32 %v391_v53, %v388_v54 }
 0x520   :  { %v394_v56 = vrot.slane %v392_v55, 1  ;;  %v498_v16 = vrot.slane %v392_v55, 7  ;;  %v1048_v22 = vsel %vm1047_vm2, %v2904_v33, %v392_v55 }
 0x522   :  { %395 = vrot.lane.b32.xlu0 %v394_v56, %s2783_s4 }
 0x594   :  { %v396_v57 = vpop.permute.xlu0 %395 }
 0x595   :  { %2341 = vmatmul.mubr.msk.f32.vlgmr.msra.gmra.mxu1 %vm99_vm1, %v396_v57 }
 0x596   :  { %2355 = vmatpush3.msra.mxu1 %v2851_v2  ;;  %2362 = vmatprep.mubr.msk.f32.mxu1 %vm2781_vm0, %v2780_v0 }
 0x597   :  { %2356 = vmatprep.subr.mxu1 %v2780_v0 }
 0x598   :  { %2357 = vmatpush3.msra.mxu1 %v2854_v4 }
 0x599   :  { %2358 = vmatprep.subr.mxu1 %v2780_v0 }
 0x59a   :  { %2359 = vmatpush3.msra.mxu1 %v2858_v6 }
 0x59b   :  { %2360 = vmatprep.subr.mxu1 %v2780_v0 }
 0x59c   :  { %2361 = vmatpush3.msra.mxu1 %v2863_v8 }
 0x59d   :  { %2376 = vmatprep.subr.mxu1 %v2780_v0 }
 0x655   :  { %v465_v58 = vpop.f32.mrf.mxu1 }
 0x656   :  { %v479_v59 = vadd.f32 %v465_v58, %v2894_v11  ;;  %v470_v62 = vrot.slane %v465_v58, 6 }
 0x657   :  { %v2342_v60 = vpop.f32.mrf.mxu1 }
 0x658   :  { %v481_v61 = vrot.slane %v479_v59, 6  ;;  %v472_v63 = vadd.f32 %v470_v62, %v2898_v18 }
 0x65a   :  { %482 = vrot.lane.b32.xlu1 %v481_v61, %s2782_s2  ;;  %v2173_v1 = vmul.f32 -1.442695, %v472_v63 }
 0x65c   :  { %2533 = vpow2.f32 %v2173_v1 }
 0x669   :  { %v2534_v3 = vpop.eup %2533 }
 0x66a   :  { %v476_v5 = vadd.f32 1.0, %v2534_v3 }
 0x66c   :  { %2535 = vrcp.f32 %v476_v5 }
 0x679   :  { %v2536_v7 = vpop.eup %2535 }
 0x67a   :  { %v492_v15 = vsub.f32 1.0, %v2536_v7  ;;  %v500_v19 = vmul.f32 %v2536_v7, %v498_v16 }
 0x6cc   :  { %v483_v9 = vpop.permute.xlu1 %482 }
 0x6cd   :  { %v485_v10 = vmul.f32 %v2536_v7, %v483_v9 }
 0x6cf   :  { %487 = vrot.lane.b32.xlu0 %v485_v10, %s2782_s2 }
 0x741   :  { %v488_v12 = vpop.permute.xlu0 %487 }
 0x742   :  { %v490_v13 = vadd.f32 %v488_v12, %v2898_v18 }
 0x744   :  { %2537 = vtanh.f32 %v490_v13 }
 0x751   :  { %v2538_v14 = vpop.eup %2537 }
 0x752   :  { %494 = vrot.lane.b32.xlu1 %v2538_v14, %s2783_s4 }
 0x7c4   :  { %v495_v17 = vpop.permute.xlu1 %494 }
 0x7c5   :  { %v497_v20 = vmul.f32 %v495_v17, %v492_v15 }
 0x7c7   :  { %v501_v21 = vadd.f32 %v500_v19, %v497_v20 }
 0x7c9   :  { %v1050_v23 = vsel %vm1049_vm3, %v1048_v22, %v501_v21  ;;  %v503_v24 = vrot.slane %v501_v21, 2  ;;  %v607_v42 = vrot.slane %v501_v21, 7 }
 0x7cb   :  { %504 = vrot.lane.b32.xlu0 %v503_v24, %s2783_s4 }
 0x83d   :  { %v505_v25 = vpop.permute.xlu0 %504 }
 0x83e   :  { %2352 = vmatmul.mubr.msk.f32.vlgmr.msra.gmra.mxu0 %vm99_vm1, %v505_v25 }
 0x83f   :  { %2366 = vmatpush3.msra.mxu0 %v2851_v2  ;;  %2373 = vmatprep.mubr.msk.f32.mxu0 %vm2781_vm0, %v2780_v0 }
 0x840   :  { %2367 = vmatprep.subr.mxu0 %v2780_v0 }
 0x841   :  { %2368 = vmatpush3.msra.mxu0 %v2854_v4 }
 0x842   :  { %2369 = vmatprep.subr.mxu0 %v2780_v0 }
 0x843   :  { %2370 = vmatpush3.msra.mxu0 %v2858_v6 }
 0x844   :  { %2371 = vmatprep.subr.mxu0 %v2780_v0 }
 0x845   :  { %2372 = vmatpush3.msra.mxu0 %v2863_v8 }
 0x846   :  { %2387 = vmatprep.subr.mxu0 %v2780_v0 }
 0x8fe   :  { %v574_v26 = vpop.f32.mrf.mxu0 }
 0x8ff   :  { %v588_v27 = vadd.f32 %v574_v26, %v2894_v11  ;;  %v579_v30 = vrot.slane %v574_v26, 5 }
 0x900   :  { %v2353_v28 = vpop.f32.mrf.mxu0 }
 0x901   :  { %v590_v29 = vrot.slane %v588_v27, 5  ;;  %v581_v31 = vadd.f32 %v579_v30, %v2898_v18 }
 0x903   :  { %591 = vrot.lane.b32.xlu1 %v590_v29, %s2782_s2  ;;  %v2175_v32 = vmul.f32 -1.442695, %v581_v31 }
 0x905   :  { %2539 = vpow2.f32 %v2175_v32 }
 0x912   :  { %v2540_v33 = vpop.eup %2539 }
 0x913   :  { %v585_v34 = vadd.f32 1.0, %v2540_v33 }
 0x915   :  { %2541 = vrcp.f32 %v585_v34 }
 0x922   :  { %v2542_v35 = vpop.eup %2541 }
 0x923   :  { %v601_v41 = vsub.f32 1.0, %v2542_v35  ;;  %v609_v44 = vmul.f32 %v2542_v35, %v607_v42 }
 0x975   :  { %v592_v36 = vpop.permute.xlu1 %591 }
 0x976   :  { %v594_v37 = vmul.f32 %v2542_v35, %v592_v36 }
 0x978   :  { %596 = vrot.lane.b32.xlu0 %v594_v37, %s2782_s2 }
 0x9ea   :  { %v597_v38 = vpop.permute.xlu0 %596 }
 0x9eb   :  { %v599_v39 = vadd.f32 %v597_v38, %v2898_v18 }
 0x9ed   :  { %2543 = vtanh.f32 %v599_v39 }
 0x9fa   :  { %v2544_v40 = vpop.eup %2543 }
 0x9fb   :  { %603 = vrot.lane.b32.xlu1 %v2544_v40, %s2783_s4 }
 0xa6d   :  { %v604_v43 = vpop.permute.xlu1 %603 }
 0xa6e   :  { %v606_v45 = vmul.f32 %v604_v43, %v601_v41 }
 0xa70   :  { %v610_v46 = vadd.f32 %v609_v44, %v606_v45 }
 0xa72   :  { %v1052_v47 = vsel %vm1051_vm4, %v1050_v23, %v610_v46  ;;  %v612_v48 = vrot.slane %v610_v46, 3  ;;  %v716_v5 = vrot.slane %v610_v46, 7 }
 0xa74   :  { %613 = vrot.lane.b32.xlu0 %v612_v48, %s2783_s4 }
 0xae6   :  { %v614_v49 = vpop.permute.xlu0 %613 }
 0xae7   :  { %2363 = vmatmul.mubr.msk.f32.vlgmr.msra.gmra.mxu1 %vm99_vm1, %v614_v49 }
 0xae8   :  { %2377 = vmatpush3.msra.mxu1 %v2851_v2  ;;  %2384 = vmatprep.mubr.msk.f32.mxu1 %vm2781_vm0, %v2780_v0 }
 0xae9   :  { %2378 = vmatprep.subr.mxu1 %v2780_v0 }
 0xaea   :  { %2379 = vmatpush3.msra.mxu1 %v2854_v4 }
 0xaeb   :  { %2380 = vmatprep.subr.mxu1 %v2780_v0 }
 0xaec   :  { %2381 = vmatpush3.msra.mxu1 %v2858_v6 }
 0xaed   :  { %2382 = vmatprep.subr.mxu1 %v2780_v0 }
 0xaee   :  { %2383 = vmatpush3.msra.mxu1 %v2863_v8 }
 0xaef   :  { %2398 = vmatprep.subr.mxu1 %v2780_v0 }
 0xba7   :  { %v683_v50 = vpop.f32.mrf.mxu1 }
 0xba8   :  { %v697_v51 = vadd.f32 %v683_v50, %v2894_v11  ;;  %v688_v54 = vrot.slane %v683_v50, 4 }
 0xba9   :  { %v2364_v52 = vpop.f32.mrf.mxu1 }
 0xbaa   :  { %v699_v53 = vrot.slane %v697_v51, 4  ;;  %v690_v55 = vadd.f32 %v688_v54, %v2898_v18 }
 0xbac   :  { %700 = vrot.lane.b32.xlu1 %v699_v53, %s2782_s2  ;;  %v2177_v56 = vmul.f32 -1.442695, %v690_v55 }
 0xbae   :  { %2545 = vpow2.f32 %v2177_v56 }
 0xbbb   :  { %v2546_v57 = vpop.eup %2545 }
 0xbbc   :  { %v694_v58 = vadd.f32 1.0, %v2546_v57 }
 0xbbe   :  { %2547 = vrcp.f32 %v694_v58 }
 0xbcb   :  { %v2548_v59 = vpop.eup %2547 }
 0xbcc   :  { %v710_v3 = vsub.f32 1.0, %v2548_v59  ;;  %v718_v9 = vmul.f32 %v2548_v59, %v716_v5 }
 0xc1e   :  { %v701_v60 = vpop.permute.xlu1 %700 }
 0xc1f   :  { %v703_v61 = vmul.f32 %v2548_v59, %v701_v60 }
 0xc21   :  { %705 = vrot.lane.b32.xlu0 %v703_v61, %s2782_s2 }
 0xc93   :  { %v706_v62 = vpop.permute.xlu0 %705 }
 0xc94   :  { %v708_v63 = vadd.f32 %v706_v62, %v2898_v18 }
 0xc96   :  { %2549 = vtanh.f32 %v708_v63 }
 0xca3   :  { %v2550_v1 = vpop.eup %2549 }
 0xca4   :  { %712 = vrot.lane.b32.xlu1 %v2550_v1, %s2783_s4 }
 0xd16   :  { %v713_v7 = vpop.permute.xlu1 %712 }
 0xd17   :  { %v715_v10 = vmul.f32 %v713_v7, %v710_v3 }
 0xd19   :  { %v719_v12 = vadd.f32 %v718_v9, %v715_v10 }
 0xd1b   :  { %v1054_v13 = vsel %vm1053_vm5, %v1052_v47, %v719_v12  ;;  %v721_v14 = vrot.slane %v719_v12, 4  ;;  %v825_v29 = vrot.slane %v719_v12, 7 }
 0xd1d   :  { %722 = vrot.lane.b32.xlu0 %v721_v14, %s2783_s4 }
 0xd8f   :  { %v723_v15 = vpop.permute.xlu0 %722 }
 0xd90   :  { %2374 = vmatmul.mubr.msk.f32.vlgmr.msra.gmra.mxu0 %vm99_vm1, %v723_v15 }
 0xd91   :  { %2388 = vmatpush3.msra.mxu0 %v2851_v2  ;;  %2395 = vmatprep.mubr.msk.f32.mxu0 %vm2781_vm0, %v2780_v0 }
 0xd92   :  { %2389 = vmatprep.subr.mxu0 %v2780_v0 }
 0xd93   :  { %2390 = vmatpush3.msra.mxu0 %v2854_v4 }
 0xd94   :  { %2391 = vmatprep.subr.mxu0 %v2780_v0 }
 0xd95   :  { %2392 = vmatpush3.msra.mxu0 %v2858_v6 }
 0xd96   :  { %2393 = vmatprep.subr.mxu0 %v2780_v0 }
 0xd97   :  { %2394 = vmatpush3.msra.mxu0 %v2863_v8 }
 0xd98   :  { %2409 = vmatprep.subr.mxu0 %v2780_v0 }
 0xe50   :  { %v792_v16 = vpop.f32.mrf.mxu0 }
 0xe51   :  { %v806_v2 = vadd.f32 %v792_v16, %v2894_v11  ;;  %v797_v20 = vrot.slane %v792_v16, 3  ;;  %v3030_v16 = vld [vmem:[#allocation7 + $0x38] sm:$0xff] }
 0xe52   :  { %v2375_v17 = vpop.f32.mrf.mxu0 }
 0xe53   :  { %v808_v19 = vrot.slane %v806_v2, 3  ;;  %v799_v4 = vadd.f32 %v797_v20, %v2898_v18  ;;  %v3032_v2 = vld [vmem:[#allocation7 + $0x30] sm:$0xff]  ;;  %v1064_v17 = vld [vmem:[#allocation5 + $0x38] sm:$0xff]  ;;  %v3036_v20 = vld [vmem:[#allocation7 + $0x28] sm:$0xff] }
 0xe55   :  { %809 = vrot.lane.b32.xlu1 %v808_v19, %s2782_s2  ;;  %v2179_v21 = vmul.f32 -1.442695, %v799_v4  ;;  %v1063_v19 = vld [vmem:[#allocation5 + $0x30] sm:$0xff]  ;;  %v1062_v4 = vld [vmem:[#allocation5 + $0x28] sm:$0xff] }
 0xe57   :  { %2551 = vpow2.f32 %v2179_v21  ;;  %v1061_v21 = vld [vmem:[#allocation5 + $0x20] sm:$0xff] }
 0xe64   :  { %v2552_v22 = vpop.eup %2551 }
 0xe65   :  { %v803_v6 = vadd.f32 1.0, %v2552_v22 }
 0xe67   :  { %2553 = vrcp.f32 %v803_v6  ;;  %v2187_v6 = vld [vmem:[#allocation8 + $0x5] ss:$0 sm:$0xff] }
 0xe74   :  { %v2554_v23 = vpop.eup %2553 }
 0xe75   :  { %v819_v28 = vsub.f32 1.0, %v2554_v23  ;;  %v827_v31 = vmul.f32 %v2554_v23, %v825_v29 }
 0xec7   :  { %v810_v24 = vpop.permute.xlu1 %809 }
 0xec8   :  { %v812_v8 = vmul.f32 %v2554_v23, %v810_v24 }
 0xeca   :  { %814 = vrot.lane.b32.xlu0 %v812_v8, %s2782_s2 }
 0xf3c   :  { %v815_v25 = vpop.permute.xlu0 %814 }
 0xf3d   :  { %v817_v26 = vadd.f32 %v815_v25, %v2898_v18 }
 0xf3f   :  { %2555 = vtanh.f32 %v817_v26 }
 0xf4c   :  { %v2556_v27 = vpop.eup %2555 }
 0xf4d   :  { %821 = vrot.lane.b32.xlu1 %v2556_v27, %s2783_s4 }
 0xfbf   :  { %v822_v30 = vpop.permute.xlu1 %821 }
 0xfc0   :  { %v824_v32 = vmul.f32 %v822_v30, %v819_v28 }
 0xfc2   :  { %v828_v33 = vadd.f32 %v827_v31, %v824_v32 }
 0xfc4   :  { %v830_v34 = vrot.slane %v828_v33, 5  ;;  %v1056_v35 = vsel %vm1055_vm6, %v1054_v13, %v828_v33  ;;  %v934_v53 = vrot.slane %v828_v33, 7 }
 0xfc6   :  { %831 = vrot.lane.b32.xlu0 %v830_v34, %s2783_s4  ;;  %v2184_v34 = vld [vmem:[#allocation8 + $0x1] ss:$0 sm:$0xff] }
0x1038   :  { %v832_v36 = vpop.permute.xlu0 %831 }
0x1039   :  { %2385 = vmatmul.mubr.msk.f32.vlgmr.msra.gmra.mxu1 %vm99_vm1, %v832_v36 }
0x103a   :  { %2406 = vmatprep.mubr.msk.f32.mxu1 %vm2781_vm0, %v2780_v0  ;;  %2399 = vmatpush3.msra.mxu1 %v1064_v17 }
0x103b   :  { %2400 = vmatprep.subr.mxu1 %v2780_v0 }
0x103c   :  { %2401 = vmatpush3.msra.mxu1 %v1063_v19 }
0x103d   :  { %2402 = vmatprep.subr.mxu1 %v2780_v0 }
0x103e   :  { %2403 = vmatpush3.msra.mxu1 %v1062_v4 }
0x103f   :  { %2404 = vmatprep.subr.mxu1 %v2780_v0 }
0x1040   :  { %2405 = vmatpush3.msra.mxu1 %v1061_v21 }
0x1041   :  { %2420 = vmatprep.subr.mxu1 %v2780_v0 }
0x10f9   :  { %v901_v37 = vpop.f32.mrf.mxu1 }
0x10fa   :  { %v915_v38 = vadd.f32 %v901_v37, %v2894_v11  ;;  %v906_v41 = vrot.slane %v901_v37, 2 }
0x10fb   :  { %v2386_v39 = vpop.f32.mrf.mxu1 }
0x10fc   :  { %v917_v40 = vrot.slane %v915_v38, 2  ;;  %v908_v42 = vadd.f32 %v906_v41, %v2898_v18 }
0x10fe   :  { %918 = vrot.lane.b32.xlu1 %v917_v40, %s2782_s2  ;;  %v2181_v43 = vmul.f32 -1.442695, %v908_v42 }
0x1100   :  { %2557 = vpow2.f32 %v2181_v43 }
0x110d   :  { %v2558_v44 = vpop.eup %2557 }
0x110e   :  { %v912_v45 = vadd.f32 1.0, %v2558_v44 }
0x1110   :  { %2559 = vrcp.f32 %v912_v45 }
0x111d   :  { %v2560_v46 = vpop.eup %2559 }
0x111e   :  { %v928_v52 = vsub.f32 1.0, %v2560_v46  ;;  %v936_v55 = vmul.f32 %v2560_v46, %v934_v53 }
0x1170   :  { %v919_v47 = vpop.permute.xlu1 %918 }
0x1171   :  { %v921_v48 = vmul.f32 %v2560_v46, %v919_v47 }
0x1173   :  { %923 = vrot.lane.b32.xlu0 %v921_v48, %s2782_s2 }
0x11e5   :  { %v924_v49 = vpop.permute.xlu0 %923 }
0x11e6   :  { %v926_v50 = vadd.f32 %v924_v49, %v2898_v18 }
0x11e8   :  { %2561 = vtanh.f32 %v926_v50 }
0x11f5   :  { %v2562_v51 = vpop.eup %2561 }
0x11f6   :  { %930 = vrot.lane.b32.xlu1 %v2562_v51, %s2783_s4 }
0x1268   :  { %v931_v54 = vpop.permute.xlu1 %930 }
0x1269   :  { %v933_v56 = vmul.f32 %v931_v54, %v928_v52 }
0x126b   :  { %v3014_v57 = vadd.f32 %v936_v55, %v933_v56 }
0x126d   :  { %v939_v58 = vrot.slane %v3014_v57, 6  ;;  %v3019_v59 = vsel %vm1057_vm7, %v1056_v35, %v3014_v57  ;;  %v1043_v24 = vrot.slane %v3014_v57, 7 }
0x126f   :  { %940 = vrot.lane.b32.xlu0 %v939_v58, %s2783_s4 }
0x12e1   :  { %v941_v60 = vpop.permute.xlu0 %940 }
0x12e2   :  { %2396 = vmatmul.mubr.msk.f32.vlgmr.msra.gmra.mxu0 %vm99_vm1, %v941_v60 }
0x12e3   :  { %2417 = vmatprep.mubr.msk.f32.mxu0 %vm2781_vm0, %v2780_v0  ;;  %2410 = vmatpush3.msra.mxu0 %v3030_v16 }
0x12e4   :  { %2411 = vmatprep.subr.mxu0 %v2780_v0 }
0x12e5   :  { %2412 = vmatpush3.msra.mxu0 %v3032_v2 }
0x12e6   :  { %2413 = vmatprep.subr.mxu0 %v2780_v0 }
0x12e7   :  { %2414 = vmatpush3.msra.mxu0 %v3036_v20 }
0x12e8   :  { %2415 = vmatprep.subr.mxu0 %v2780_v0 }
0x13a2   :  { %v1010_v61 = vpop.f32.mrf.mxu0 }
0x13a3   :  { %v1024_v62 = vadd.f32 %v1010_v61, %v2894_v11  ;;  %v1015_v3 = vrot.slane %v1010_v61, 1 }
0x13a4   :  { %v2397_v63 = vpop.f32.mrf.mxu0 }
0x13a5   :  { %v1026_v1 = vrot.slane %v1024_v62, 1  ;;  %v1017_v5 = vadd.f32 %v1015_v3, %v2898_v18 }
0x13a7   :  { %1027 = vrot.lane.b32.xlu1 %v1026_v1, %s2782_s2  ;;  %v2183_v7 = vmul.f32 -1.442695, %v1017_v5 }
0x13a9   :  { %2563 = vpow2.f32 %v2183_v7 }
0x13b6   :  { %v2564_v9 = vpop.eup %2563 }
0x13b7   :  { %v1021_v10 = vadd.f32 1.0, %v2564_v9 }
0x13b9   :  { %2565 = vrcp.f32 %v1021_v10 }
0x13c6   :  { %v2566_v12 = vpop.eup %2565 }
0x13c7   :  { %v1037_v23 = vsub.f32 1.0, %v2566_v12  ;;  %v1045_v25 = vmul.f32 %v2566_v12, %v1043_v24 }
0x1419   :  { %v1028_v13 = vpop.permute.xlu1 %1027 }
0x141a   :  { %v1030_v14 = vmul.f32 %v2566_v12, %v1028_v13 }
0x141c   :  { %1032 = vrot.lane.b32.xlu0 %v1030_v14, %s2782_s2 }
0x148e   :  { %v1033_v15 = vpop.permute.xlu0 %1032 }
0x148f   :  { %v1035_v11 = vadd.f32 %v1033_v15, %v2898_v18  ;;  %v3041_v18 = vld [vmem:[#allocation7 + $0x20] sm:$0xff] }
0x1490   :  { %2416 = vmatpush3.msra.mxu0 %v3041_v18 }
0x1491   :  { %2567 = vtanh.f32 %v1035_v11  ;;  %2418 = vmatmul.mubr.f32.vlgmr.msra.gmra.mxu0 %v2780_v0  ;;  %2431 = vmatprep.subr.mxu0 %v2780_v0 }
0x1492   :  { %2432 = vmatpush3.msra.mxu0 %v3030_v16  ;;  %2439 = vmatprep.mubr.msk.f32.mxu0 %vm2781_vm0, %v2780_v0 }
0x1493   :  { %2433 = vmatprep.subr.mxu0 %v2780_v0 }
0x1494   :  { %2434 = vmatpush3.msra.mxu0 %v3032_v2 }
0x1495   :  { %2435 = vmatprep.subr.mxu0 %v2780_v0 }
0x1496   :  { %2436 = vmatpush3.msra.mxu0 %v3036_v20 }
0x1497   :  { %2437 = vmatprep.subr.mxu0 %v2780_v0 }
0x1498   :  { %2438 = vmatpush3.msra.mxu0 %v3041_v18 }
0x1499   :  { %2453 = vmatprep.subr.mxu0 %v2780_v0 }
0x149e   :  { %v2568_v22 = vpop.eup %2567 }
0x149f   :  { %1039 = vrot.lane.b32.xlu1 %v2568_v22, %s2783_s4 }
0x14a3   :  { %1232 = vrot.lane.b32.xlu1 %v2187_v6, %s2782_s2 }
0x1511   :  { %v1040_v8 = vpop.permute.xlu1 %1039 }
0x1512   :  { %v1042_v26 = vmul.f32 %v1040_v8, %v1037_v23 }
0x1514   :  { %v3064_v27 = vadd.f32 %v1045_v25, %v1042_v26 }
0x1515   :  { %v3070_v29 = vpop.permute.xlu1 %1232 }
0x1516   :  { %v1060_v28 = vsel %vm1059_vm8, %v3019_v59, %v3064_v27 }
0x1517   :  { %1072 = vrot.lane.b32.xlu0 %v1060_v28, %s2783_s4 }
0x1551   :  { %v1216_v30 = vpop.f32.mrf.mxu0 }
0x1552   :  { %v1235_v31 = vadd.f32 %v3070_v29, %v1216_v30 }
0x1553   :  { %v2419_v32 = vpop.f32.mrf.mxu0 }
0x1554   :  { %1237 = vrot.lane.b32.xlu0 %v1235_v31, %s2782_s2 }
0x1589   :  { %v1073_v33 = vpop.permute.xlu0 %1072 }
0x158a   :  { %2407 = vmatmul.mubr.msk.f32.vlgmr.msra.gmra.mxu1 %vm99_vm1, %v1073_v33 }
0x158b   :  { %2421 = vmatpush3.msra.mxu1 %v3030_v16  ;;  %2428 = vmatprep.mubr.msk.f32.mxu1 %vm2781_vm0, %v2780_v0 }
0x158c   :  { %2422 = vmatprep.subr.mxu1 %v2780_v0 }
0x158d   :  { %2423 = vmatpush3.msra.mxu1 %v3032_v2 }
0x158e   :  { %2424 = vmatprep.subr.mxu1 %v2780_v0 }
0x158f   :  { %2425 = vmatpush3.msra.mxu1 %v3036_v20 }
0x1590   :  { %2426 = vmatprep.subr.mxu1 %v2780_v0 }
0x1591   :  { %2427 = vmatpush3.msra.mxu1 %v3041_v18 }
0x1592   :  { %2442 = vmatprep.subr.mxu1 %v2780_v0 }
0x15c6   :  { %v1238_v42 = vpop.permute.xlu0 %1237 }
0x164a   :  { %v1142_v35 = vpop.f32.mrf.mxu1 }
0x164b   :  { %v3085_v36 = vadd.f32 %v2184_v34, %v1142_v35 }
0x164c   :  { %v2408_v37 = vpop.f32.mrf.mxu1 }
0x164d   :  { %v1220_v38 = vadd.f32 %v1216_v30, %v3085_v36 }
0x164f   :  { %v2186_v39 = vmul.f32 -1.442695, %v1220_v38 }
0x1651   :  { %2569 = vpow2.f32 %v2186_v39 }
0x165e   :  { %v2570_v40 = vpop.eup %2569 }
0x165f   :  { %v1224_v41 = vadd.f32 1.0, %v2570_v40 }
0x1661   :  { %2571 = vrcp.f32 %v1224_v41 }
0x166e   :  { %v2572_v43 = vpop.eup %2571 }
0x166f   :  { %v1240_v44 = vmul.f32 %v2572_v43, %v1238_v42  ;;  %v1247_v48 = vsub.f32 1.0, %v2572_v43  ;;  %v1253_v50 = vmul.f32 0.0, %v2572_v43 }
0x1671   :  { %1242 = vrot.lane.b32.xlu1 %v1240_v44, %s2782_s2 }
0x16e3   :  { %v1243_v45 = vpop.permute.xlu1 %1242 }
0x16e4   :  { %v1245_v46 = vadd.f32 %v1243_v45, %v3085_v36 }
0x16e6   :  { %2573 = vtanh.f32 %v1245_v46 }
0x16f3   :  { %v2574_v47 = vpop.eup %2573 }
0x16f4   :  { %1249 = vrot.lane.b32.xlu0 %v2574_v47, %s2783_s4 }
0x1766   :  { %v1250_v49 = vpop.permute.xlu0 %1249 }
0x1767   :  { %v1252_v51 = vmul.f32 %v1250_v49, %v1247_v48 }
0x1769   :  { %v3091_v52 = vadd.f32 %v1253_v50, %v1252_v51 }
0x176b   :  { %1256 = vrot.lane.b32.xlu1 %v3091_v52, %s2783_s4  ;;  %v1359_v12 = vrot.slane %v3091_v52, 7 }
0x17dd   :  { %v1257_v53 = vpop.permute.xlu1 %1256 }
0x17de   :  { %2429 = vmatmul.mubr.msk.f32.vlgmr.msra.gmra.mxu1 %vm99_vm1, %v1257_v53 }
0x17df   :  { %2443 = vmatpush3.msra.mxu1 %v3030_v16  ;;  %2450 = vmatprep.mubr.msk.f32.mxu1 %vm2781_vm0, %v2780_v0 }
0x17e0   :  { %2444 = vmatprep.subr.mxu1 %v2780_v0 }
0x17e1   :  { %2445 = vmatpush3.msra.mxu1 %v3032_v2 }
0x17e2   :  { %2446 = vmatprep.subr.mxu1 %v2780_v0 }
0x17e3   :  { %2447 = vmatpush3.msra.mxu1 %v3036_v20 }
0x17e4   :  { %2448 = vmatprep.subr.mxu1 %v2780_v0 }
0x17e5   :  { %2449 = vmatpush3.msra.mxu1 %v3041_v18 }
0x17e6   :  { %2464 = vmatprep.subr.mxu1 %v2780_v0 }
0x189e   :  { %v1326_v54 = vpop.f32.mrf.mxu1 }
0x189f   :  { %v1340_v55 = vadd.f32 %v1326_v54, %v3070_v29  ;;  %v1331_v58 = vrot.slane %v1326_v54, 7 }
0x18a0   :  { %v2430_v56 = vpop.f32.mrf.mxu1 }
0x18a1   :  { %v1342_v57 = vrot.slane %v1340_v55, 7  ;;  %v1333_v59 = vadd.f32 %v1331_v58, %v3085_v36 }
0x18a3   :  { %1343 = vrot.lane.b32.xlu0 %v1342_v57, %s2782_s2  ;;  %v2189_v60 = vmul.f32 -1.442695, %v1333_v59 }
0x18a5   :  { %2575 = vpow2.f32 %v2189_v60 }
0x18b2   :  { %v2576_v61 = vpop.eup %2575 }
0x18b3   :  { %v1337_v62 = vadd.f32 1.0, %v2576_v61 }
0x18b5   :  { %2577 = vrcp.f32 %v1337_v62 }
0x18c2   :  { %v2578_v63 = vpop.eup %2577 }
0x18c3   :  { %v1353_v10 = vsub.f32 1.0, %v2578_v63  ;;  %v1361_v15 = vmul.f32 %v2578_v63, %v1359_v12 }
0x1915   :  { %v1344_v1 = vpop.permute.xlu0 %1343 }
0x1916   :  { %v1346_v3 = vmul.f32 %v2578_v63, %v1344_v1 }
0x1918   :  { %1348 = vrot.lane.b32.xlu1 %v1346_v3, %s2782_s2 }
0x198a   :  { %v1349_v5 = vpop.permute.xlu1 %1348 }
0x198b   :  { %v1351_v7 = vadd.f32 %v1349_v5, %v3085_v36 }
0x198d   :  { %2579 = vtanh.f32 %v1351_v7 }
0x199a   :  { %v2580_v9 = vpop.eup %2579 }
0x199b   :  { %1355 = vrot.lane.b32.xlu0 %v2580_v9, %s2783_s4 }
0x1a0d   :  { %v1356_v13 = vpop.permute.xlu0 %1355 }
0x1a0e   :  { %v1358_v14 = vmul.f32 %v1356_v13, %v1353_v10 }
0x1a10   :  { %v1362_v11 = vadd.f32 %v1361_v15, %v1358_v14 }
0x1a12   :  { %v1364_v17 = vrot.slane %v1362_v11, 1  ;;  %v1468_v37 = vrot.slane %v1362_v11, 7  ;;  %v2017_v42 = vsel %vm1047_vm2, %v3091_v52, %v1362_v11 }
0x1a14   :  { %1365 = vrot.lane.b32.xlu1 %v1364_v17, %s2783_s4 }
0x1a86   :  { %v1366_v19 = vpop.permute.xlu1 %1365 }
0x1a87   :  { %2440 = vmatmul.mubr.msk.f32.vlgmr.msra.gmra.mxu0 %vm99_vm1, %v1366_v19 }
0x1a88   :  { %2454 = vmatpush3.msra.mxu0 %v3030_v16  ;;  %2461 = vmatprep.mubr.msk.f32.mxu0 %vm2781_vm0, %v2780_v0 }
0x1a89   :  { %2455 = vmatprep.subr.mxu0 %v2780_v0 }
0x1a8a   :  { %2456 = vmatpush3.msra.mxu0 %v3032_v2 }
0x1a8b   :  { %2457 = vmatprep.subr.mxu0 %v2780_v0 }
0x1a8c   :  { %2458 = vmatpush3.msra.mxu0 %v3036_v20 }
0x1a8d   :  { %2459 = vmatprep.subr.mxu0 %v2780_v0 }
0x1a8e   :  { %2460 = vmatpush3.msra.mxu0 %v3041_v18 }
0x1a8f   :  { %2475 = vmatprep.subr.mxu0 %v2780_v0 }
0x1b47   :  { %v1435_v4 = vpop.f32.mrf.mxu0 }
0x1b48   :  { %v1449_v21 = vadd.f32 %v1435_v4, %v3070_v29  ;;  %v1440_v23 = vrot.slane %v1435_v4, 6 }
0x1b49   :  { %v2441_v22 = vpop.f32.mrf.mxu0 }
0x1b4a   :  { %v1451_v6 = vrot.slane %v1449_v21, 6  ;;  %v1442_v24 = vadd.f32 %v1440_v23, %v3085_v36 }
0x1b4c   :  { %1452 = vrot.lane.b32.xlu0 %v1451_v6, %s2782_s2  ;;  %v2191_v8 = vmul.f32 -1.442695, %v1442_v24 }
0x1b4e   :  { %2581 = vpow2.f32 %v2191_v8 }
0x1b5b   :  { %v2582_v25 = vpop.eup %2581 }
0x1b5c   :  { %v1446_v26 = vadd.f32 1.0, %v2582_v25 }
0x1b5e   :  { %2583 = vrcp.f32 %v1446_v26 }
0x1b6b   :  { %v2584_v28 = vpop.eup %2583 }
0x1b6c   :  { %v1462_v35 = vsub.f32 1.0, %v2584_v28  ;;  %v1470_v39 = vmul.f32 %v2584_v28, %v1468_v37 }
0x1bbe   :  { %v1453_v30 = vpop.permute.xlu0 %1452 }
0x1bbf   :  { %v1455_v31 = vmul.f32 %v2584_v28, %v1453_v30 }
0x1bc1   :  { %1457 = vrot.lane.b32.xlu1 %v1455_v31, %s2782_s2 }
0x1c33   :  { %v1458_v32 = vpop.permute.xlu1 %1457 }
0x1c34   :  { %v1460_v33 = vadd.f32 %v1458_v32, %v3085_v36 }
0x1c36   :  { %2585 = vtanh.f32 %v1460_v33 }
0x1c43   :  { %v2586_v34 = vpop.eup %2585 }
0x1c44   :  { %1464 = vrot.lane.b32.xlu0 %v2586_v34, %s2783_s4 }
0x1cb6   :  { %v1465_v38 = vpop.permute.xlu0 %1464 }
0x1cb7   :  { %v1467_v40 = vmul.f32 %v1465_v38, %v1462_v35 }
0x1cb9   :  { %v1471_v41 = vadd.f32 %v1470_v39, %v1467_v40 }
0x1cbb   :  { %v2018_v43 = vsel %vm1049_vm3, %v2017_v42, %v1471_v41  ;;  %v1473_v44 = vrot.slane %v1471_v41, 2  ;;  %v1577_v62 = vrot.slane %v1471_v41, 7 }
0x1cbd   :  { %1474 = vrot.lane.b32.xlu1 %v1473_v44, %s2783_s4 }
0x1d2f   :  { %v1475_v45 = vpop.permute.xlu1 %1474 }
0x1d30   :  { %2451 = vmatmul.mubr.msk.f32.vlgmr.msra.gmra.mxu1 %vm99_vm1, %v1475_v45 }
0x1d31   :  { %2465 = vmatpush3.msra.mxu1 %v3030_v16  ;;  %2472 = vmatprep.mubr.msk.f32.mxu1 %vm2781_vm0, %v2780_v0 }
0x1d32   :  { %2466 = vmatprep.subr.mxu1 %v2780_v0 }
0x1d33   :  { %2467 = vmatpush3.msra.mxu1 %v3032_v2 }
0x1d34   :  { %2468 = vmatprep.subr.mxu1 %v2780_v0 }
0x1d35   :  { %2469 = vmatpush3.msra.mxu1 %v3036_v20 }
0x1d36   :  { %2470 = vmatprep.subr.mxu1 %v2780_v0 }
0x1d37   :  { %2471 = vmatpush3.msra.mxu1 %v3041_v18 }
0x1d38   :  { %2486 = vmatprep.subr.mxu1 %v2780_v0 }
0x1df0   :  { %v1544_v46 = vpop.f32.mrf.mxu1 }
0x1df1   :  { %v1558_v47 = vadd.f32 %v1544_v46, %v3070_v29  ;;  %v1549_v50 = vrot.slane %v1544_v46, 5 }
0x1df2   :  { %v2452_v48 = vpop.f32.mrf.mxu1 }
0x1df3   :  { %v1560_v49 = vrot.slane %v1558_v47, 5  ;;  %v1551_v51 = vadd.f32 %v1549_v50, %v3085_v36 }
0x1df5   :  { %1561 = vrot.lane.b32.xlu0 %v1560_v49, %s2782_s2  ;;  %v2193_v52 = vmul.f32 -1.442695, %v1551_v51 }
0x1df7   :  { %2587 = vpow2.f32 %v2193_v52 }
0x1e04   :  { %v2588_v53 = vpop.eup %2587 }
0x1e05   :  { %v1555_v54 = vadd.f32 1.0, %v2588_v53 }
0x1e07   :  { %2589 = vrcp.f32 %v1555_v54 }
0x1e14   :  { %v2590_v55 = vpop.eup %2589 }
0x1e15   :  { %v1571_v61 = vsub.f32 1.0, %v2590_v55  ;;  %v1579_v1 = vmul.f32 %v2590_v55, %v1577_v62 }
0x1e67   :  { %v1562_v56 = vpop.permute.xlu0 %1561 }
0x1e68   :  { %v1564_v57 = vmul.f32 %v2590_v55, %v1562_v56 }
0x1e6a   :  { %1566 = vrot.lane.b32.xlu1 %v1564_v57, %s2782_s2 }
0x1edc   :  { %v1567_v58 = vpop.permute.xlu1 %1566 }
0x1edd   :  { %v1569_v59 = vadd.f32 %v1567_v58, %v3085_v36 }
0x1edf   :  { %2591 = vtanh.f32 %v1569_v59 }
0x1eec   :  { %v2592_v60 = vpop.eup %2591 }
0x1eed   :  { %1573 = vrot.lane.b32.xlu0 %v2592_v60, %s2783_s4 }
0x1f5f   :  { %v1574_v63 = vpop.permute.xlu0 %1573 }
0x1f60   :  { %v1576_v3 = vmul.f32 %v1574_v63, %v1571_v61 }
0x1f62   :  { %v1580_v5 = vadd.f32 %v1579_v1, %v1576_v3 }
0x1f64   :  { %v2019_v7 = vsel %vm1051_vm4, %v2018_v43, %v1580_v5  ;;  %v1582_v9 = vrot.slane %v1580_v5, 3  ;;  %v1686_v28 = vrot.slane %v1580_v5, 7 }
0x1f66   :  { %1583 = vrot.lane.b32.xlu1 %v1582_v9, %s2783_s4 }
0x1fd8   :  { %v1584_v10 = vpop.permute.xlu1 %1583 }
0x1fd9   :  { %2462 = vmatmul.mubr.msk.f32.vlgmr.msra.gmra.mxu0 %vm99_vm1, %v1584_v10 }
0x1fda   :  { %2476 = vmatpush3.msra.mxu0 %v3030_v16  ;;  %2483 = vmatprep.mubr.msk.f32.mxu0 %vm2781_vm0, %v2780_v0 }
0x1fdb   :  { %2477 = vmatprep.subr.mxu0 %v2780_v0 }
0x1fdc   :  { %2478 = vmatpush3.msra.mxu0 %v3032_v2 }
0x1fdd   :  { %2479 = vmatprep.subr.mxu0 %v2780_v0 }
0x1fde   :  { %2480 = vmatpush3.msra.mxu0 %v3036_v20 }
0x1fdf   :  { %2481 = vmatprep.subr.mxu0 %v2780_v0 }
0x1fe0   :  { %2482 = vmatpush3.msra.mxu0 %v3041_v18 }
0x1fe1   :  { %2497 = vmatprep.subr.mxu0 %v2780_v0 }
0x2099   :  { %v1653_v12 = vpop.f32.mrf.mxu0 }
0x209a   :  { %v1667_v13 = vadd.f32 %v1653_v12, %v3070_v29  ;;  %v1658_v11 = vrot.slane %v1653_v12, 4 }
0x209b   :  { %v2463_v14 = vpop.f32.mrf.mxu0 }
0x209c   :  { %v1669_v15 = vrot.slane %v1667_v13, 4  ;;  %v1660_v17 = vadd.f32 %v1658_v11, %v3085_v36 }
0x209e   :  { %1670 = vrot.lane.b32.xlu0 %v1669_v15, %s2782_s2  ;;  %v2195_v19 = vmul.f32 -1.442695, %v1660_v17 }
0x20a0   :  { %2593 = vpow2.f32 %v2195_v19 }
0x20ad   :  { %v2594_v4 = vpop.eup %2593 }
0x20ae   :  { %v1664_v21 = vadd.f32 1.0, %v2594_v4 }
0x20b0   :  { %2595 = vrcp.f32 %v1664_v21 }
0x20bd   :  { %v2596_v22 = vpop.eup %2595 }
0x20be   :  { %v1680_v26 = vsub.f32 1.0, %v2596_v22  ;;  %v1688_v31 = vmul.f32 %v2596_v22, %v1686_v28 }
0x2110   :  { %v1671_v6 = vpop.permute.xlu0 %1670 }
0x2111   :  { %v1673_v23 = vmul.f32 %v2596_v22, %v1671_v6 }
0x2113   :  { %1675 = vrot.lane.b32.xlu1 %v1673_v23, %s2782_s2 }
0x2185   :  { %v1676_v24 = vpop.permute.xlu1 %1675 }
0x2186   :  { %v1678_v8 = vadd.f32 %v1676_v24, %v3085_v36 }
0x2188   :  { %2597 = vtanh.f32 %v1678_v8 }
0x2195   :  { %v2598_v25 = vpop.eup %2597 }
0x2196   :  { %1682 = vrot.lane.b32.xlu0 %v2598_v25, %s2783_s4 }
0x2208   :  { %v1683_v30 = vpop.permute.xlu0 %1682 }
0x2209   :  { %v1685_v32 = vmul.f32 %v1683_v30, %v1680_v26 }
0x220b   :  { %v1689_v33 = vadd.f32 %v1688_v31, %v1685_v32 }
0x220d   :  { %v2020_v34 = vsel %vm1053_vm5, %v2019_v7, %v1689_v33  ;;  %v1691_v35 = vrot.slane %v1689_v33, 4  ;;  %v1795_v50 = vrot.slane %v1689_v33, 7 }
0x220f   :  { %1692 = vrot.lane.b32.xlu1 %v1691_v35, %s2783_s4 }
0x2281   :  { %v1693_v37 = vpop.permute.xlu1 %1692 }
0x2282   :  { %2473 = vmatmul.mubr.msk.f32.vlgmr.msra.gmra.mxu1 %vm99_vm1, %v1693_v37 }
0x2283   :  { %2487 = vmatpush3.msra.mxu1 %v3030_v16  ;;  %2494 = vmatprep.mubr.msk.f32.mxu1 %vm2781_vm0, %v2780_v0 }
0x2284   :  { %2488 = vmatprep.subr.mxu1 %v2780_v0 }
0x2285   :  { %2489 = vmatpush3.msra.mxu1 %v3032_v2 }
0x2286   :  { %2490 = vmatprep.subr.mxu1 %v2780_v0 }
0x2287   :  { %2491 = vmatpush3.msra.mxu1 %v3036_v20 }
0x2288   :  { %2492 = vmatprep.subr.mxu1 %v2780_v0 }
0x2289   :  { %2493 = vmatpush3.msra.mxu1 %v3041_v18 }
0x2342   :  { %v1762_v38 = vpop.f32.mrf.mxu1 }
0x2343   :  { %v1776_v39 = vadd.f32 %v1762_v38, %v3070_v29  ;;  %v1767_v41 = vrot.slane %v1762_v38, 3 }
0x2344   :  { %v2474_v40 = vpop.f32.mrf.mxu1 }
0x2345   :  { %v1778_v16 = vrot.slane %v1776_v39, 3  ;;  %v1769_v42 = vadd.f32 %v1767_v41, %v3085_v36  ;;  %v2027_v39 = vld [vmem:[#allocation10 + $0x18] sm:$0xff]  ;;  %v2026_v40 = vld [vmem:[#allocation10 + $0x10] sm:$0xff]  ;;  %v2024_v41 = vld [vmem:[#allocation10] sm:$0xff] }
0x2347   :  { %1779 = vrot.lane.b32.xlu0 %v1778_v16, %s2782_s2  ;;  %v2197_v43 = vmul.f32 -1.442695, %v1769_v42  ;;  %v2025_v16 = vld [vmem:[#allocation10 + $0x8] sm:$0xff] }
0x2349   :  { %2599 = vpow2.f32 %v2197_v43 }
0x2356   :  { %v2600_v2 = vpop.eup %2599 }
0x2357   :  { %v1773_v44 = vadd.f32 1.0, %v2600_v2 }
0x2359   :  { %2601 = vrcp.f32 %v1773_v44 }
0x2366   :  { %v2602_v20 = vpop.eup %2601 }
0x2367   :  { %v1789_v49 = vsub.f32 1.0, %v2602_v20  ;;  %v1797_v52 = vmul.f32 %v2602_v20, %v1795_v50 }
0x23b9   :  { %v1780_v45 = vpop.permute.xlu0 %1779 }
0x23ba   :  { %v1782_v46 = vmul.f32 %v2602_v20, %v1780_v45 }
0x23bc   :  { %1784 = vrot.lane.b32.xlu1 %v1782_v46, %s2782_s2  ;;  %v2123_v46 = vrot.slane %v3064_v27, 7 }
0x242e   :  { %v1785_v18 = vpop.permute.xlu1 %1784 }
0x242f   :  { %v1787_v47 = vadd.f32 %v1785_v18, %v3085_v36 }
0x2431   :  { %2603 = vtanh.f32 %v1787_v47 }
0x243e   :  { %v2604_v48 = vpop.eup %2603 }
0x243f   :  { %1791 = vrot.lane.b32.xlu0 %v2604_v48, %s2783_s4 }
0x24b1   :  { %v1792_v51 = vpop.permute.xlu0 %1791 }
0x24b2   :  { %v1794_v53 = vmul.f32 %v1792_v51, %v1789_v49  ;;  %v2202_v49 = vld [vmem:[#allocation8 + $0x2] ss:$0 sm:$0xff] }
0x24b4   :  { %v1798_v54 = vadd.f32 %v1797_v52, %v1794_v53 }
0x24b6   :  { %v1800_v55 = vrot.slane %v1798_v54, 5  ;;  %v2021_v56 = vsel %vm1055_vm6, %v2020_v34, %v1798_v54  ;;  %v1904_v11 = vrot.slane %v1798_v54, 7 }
0x24b8   :  { %1801 = vrot.lane.b32.xlu1 %v1800_v55, %s2783_s4 }
0x252a   :  { %v1802_v57 = vpop.permute.xlu1 %1801 }
0x252b   :  { %2484 = vmatmul.mubr.msk.f32.vlgmr.msra.gmra.mxu0 %vm99_vm1, %v1802_v57 }
0x252c   :  { %2505 = vmatprep.mubr.msk.f32.mxu0 %vm2781_vm0, %v2780_v0  ;;  %2498 = vmatpush3.msra.mxu0 %v2027_v39 }
0x252d   :  { %2499 = vmatprep.subr.mxu0 %v2780_v0 }
0x252e   :  { %2500 = vmatpush3.msra.mxu0 %v2026_v40 }
0x252f   :  { %2501 = vmatprep.subr.mxu0 %v2780_v0 }
0x2530   :  { %2502 = vmatpush3.msra.mxu0 %v2025_v16 }
0x2531   :  { %2503 = vmatprep.subr.mxu0 %v2780_v0 }
0x2532   :  { %2504 = vmatpush3.msra.mxu0 %v2024_v41 }
0x25eb   :  { %v1871_v58 = vpop.f32.mrf.mxu0 }
0x25ec   :  { %v1885_v59 = vadd.f32 %v1871_v58, %v3070_v29  ;;  %v1876_v62 = vrot.slane %v1871_v58, 2 }
0x25ed   :  { %v2485_v60 = vpop.f32.mrf.mxu0 }
0x25ee   :  { %v1887_v61 = vrot.slane %v1885_v59, 2  ;;  %v1878_v63 = vadd.f32 %v1876_v62, %v3085_v36 }
0x25f0   :  { %1888 = vrot.lane.b32.xlu0 %v1887_v61, %s2782_s2  ;;  %v2199_v1 = vmul.f32 -1.442695, %v1878_v63 }
0x25f2   :  { %2605 = vpow2.f32 %v2199_v1 }
0x25ff   :  { %v2606_v3 = vpop.eup %2605 }
0x2600   :  { %v1882_v5 = vadd.f32 1.0, %v2606_v3 }
0x2602   :  { %2607 = vrcp.f32 %v1882_v5 }
0x260f   :  { %v2608_v7 = vpop.eup %2607 }
0x2610   :  { %v1898_v15 = vsub.f32 1.0, %v2608_v7  ;;  %v1906_v19 = vmul.f32 %v2608_v7, %v1904_v11 }
0x2662   :  { %v1889_v9 = vpop.permute.xlu0 %1888 }
0x2663   :  { %v1891_v10 = vmul.f32 %v2608_v7, %v1889_v9 }
0x2665   :  { %1893 = vrot.lane.b32.xlu1 %v1891_v10, %s2782_s2 }
0x26d7   :  { %v1894_v12 = vpop.permute.xlu1 %1893 }
0x26d8   :  { %v1896_v13 = vadd.f32 %v1894_v12, %v3085_v36 }
0x26da   :  { %2609 = vtanh.f32 %v1896_v13 }
0x26e7   :  { %v2610_v14 = vpop.eup %2609 }
0x26e8   :  { %1900 = vrot.lane.b32.xlu0 %v2610_v14, %s2783_s4 }
0x275a   :  { %v1901_v17 = vpop.permute.xlu0 %1900 }
0x275b   :  { %v1903_v4 = vmul.f32 %v1901_v17, %v1898_v15 }
0x275d   :  { %v1907_v21 = vadd.f32 %v1906_v19, %v1903_v4 }
0x275f   :  { %v1909_v22 = vrot.slane %v1907_v21, 6  ;;  %v2022_v6 = vsel %vm1057_vm7, %v2021_v56, %v1907_v21 }
0x2761   :  { %1910 = vrot.lane.b32.xlu1 %v1909_v22, %s2783_s4 }
0x27d3   :  { %v1911_v23 = vpop.permute.xlu1 %1910 }
0x27d4   :  { %2495 = vmatmul.mubr.msk.f32.vlgmr.msra.gmra.mxu1 %vm99_vm1, %v1911_v23 }
0x2894   :  { %v1980_v24 = vpop.f32.mrf.mxu1 }
0x2895   :  { %v1994_v8 = vadd.f32 %v1980_v24, %v3070_v29  ;;  %v1985_v28 = vrot.slane %v1980_v24, 1 }
0x2896   :  { %v2496_v25 = vpop.f32.mrf.mxu1 }
0x2897   :  { %v1996_v26 = vrot.slane %v1994_v8, 1  ;;  %v1987_v30 = vadd.f32 %v1985_v28, %v3085_v36 }
0x2899   :  { %1997 = vrot.lane.b32.xlu0 %v1996_v26, %s2782_s2  ;;  %v2201_v31 = vmul.f32 -1.442695, %v1987_v30 }
0x289b   :  { %2611 = vpow2.f32 %v2201_v31 }
0x28a8   :  { %v2612_v32 = vpop.eup %2611 }
0x28a9   :  { %v1991_v33 = vadd.f32 1.0, %v2612_v32 }
0x28ab   :  { %2613 = vrcp.f32 %v1991_v33 }
0x28b8   :  { %v2614_v34 = vpop.eup %2613 }
0x28b9   :  { %v2007_v43 = vsub.f32 1.0, %v2614_v34 }
0x290b   :  { %v1998_v35 = vpop.permute.xlu0 %1997 }
0x290c   :  { %v2000_v37 = vmul.f32 %v2614_v34, %v1998_v35 }
0x290e   :  { %2002 = vrot.lane.b32.xlu1 %v2000_v37, %s2782_s2 }
0x2980   :  { %v2003_v38 = vpop.permute.xlu1 %2002 }
0x2981   :  { %v2005_v29 = vadd.f32 %v2003_v38, %v3085_v36  ;;  %v2013_v36 = vrot.slane %v1907_v21, 7 }
0x2983   :  { %2615 = vtanh.f32 %v2005_v29  ;;  %v2015_v44 = vmul.f32 %v2614_v34, %v2013_v36 }
0x2990   :  { %v2616_v42 = vpop.eup %2615 }
0x2991   :  { %2009 = vrot.lane.b32.xlu0 %v2616_v42, %s2783_s4 }
0x2a03   :  { %v2010_v2 = vpop.permute.xlu0 %2009 }
0x2a04   :  { %v2012_v20 = vmul.f32 %v2010_v2, %v2007_v43 }
0x2a06   :  { %v2016_v45 = vadd.f32 %v2015_v44, %v2012_v20 }
0x2a08   :  { %v2126_v18 = vrot.slane %v2016_v45, 6  ;;  %v2023_v47 = vsel %vm1059_vm8, %v2022_v6, %v2016_v45 }
0x2a09   :  { %2034 = vrot.lane.b32.xlu1 %v2023_v47, %s2783_s4 }
0x2a0a   :  { %v2128_v48 = vsel %vm1047_vm2, %v2123_v46, %v2126_v18 }
0x2a7b   :  { %v2035_v0 = vpop.permute.xlu1 %2034 }
0x2a7c   :  { %2506 = vmatmul.mubr.msk.f32.vlgmr.msra.gmra.mxu0 %vm99_vm1, %v2035_v0 }
0x2b3c   :  { %v2104_v50 = vpop.f32.mrf.mxu0 }
0x2b3d   :  { %v2105_v51 = vadd.f32 %v2202_v49, %v2104_v50 }
0x2b3e   :  { %v2507_v52 = vpop.f32.mrf.mxu0 }
0x2b3f   :  { %2108 = vmax.xlane.f32.xlu0 %v2105_v51 }
0x2b55   :  { %2130 = vrot.lane.b32.xlu0 %v2128_v48, %s2783_s4 }
0x2bc8   :  { %v2109_v53 = vpop.xlane.xlu0 %2108 }
0x2bc9   :  { %v2110_v54 = vsub.f32 %v2105_v51, %v2109_v53 }
0x2bcb   :  { %v2111_v27 = vmul.f32 1.442695, %v2110_v54 }
0x2bcc   :  { %v2131_v55 = vpop.permute.xlu0 %2130 }
0x2bcd   :  { %2617 = vpow2.f32 %v2111_v27  ;;  %2134 = vst.msk [vmem:[#allocation12] sm:$0x3] %vm2133_vm9, %v2131_v55 }
0x2bda   :  { %v2618_v56 = vpop.eup %2617 }
0x2bdb   :  { %2113 = vadd.xlane.f32.xlu1 %v2618_v56 }
0x2bdc   :  { %2734 = shalt.err (!%p2731_p1)
}
0x2bdd   :  { %2154 = dma.vmem_to_hbm [thread:$0]  %s2152_s22, 32, %s3230_s6, [#allocation13]  }
0x2bde   :  { %s2785_s26 = smov [#allocation11]  }
0x2bdf   :  { %s2141_s27 = sshll.u32 %s2785_s26, 4  ;;  %s2142_s27 = int_to_ptr.vmem [resolvable:$true] %s2141_s27 }
0x2be0   :  { %s2743_s28 = scalar_lea.vmem %s2142_s27, 256  ;;  %p2748_p3 = scmp.lt.s32.totalorder %s2142_s27, %s2142_s27 }
0x2be1   :  { %p2744_p2 = scmp.ne.s32.totalorder %s2142_s27, %s2743_s28  ;;  %p2749_p4 = scmp.lt.s32.totalorder %s2743_s28, %s2743_s28 }
0x2be3   :  { %p2750_p5 = por %p2749_p4, %p2748_p3 }
0x2be5   :  { %p2751_p6 = pnand %p2750_p5, %p2744_p2 }
0x2c64   :  { %v2114_v57 = vpop.xlane.xlu1 %2113 }
0x2c65   :  { %2619 = vrcp.f32 %v2114_v57 }
0x2c66   :  { %2621 = vlog2.f32 %v2114_v57 }
0x2c72   :  { %v2620_v58 = vpop.eup %2619 }
0x2c73   :  { %v2622_v59 = vpop.eup %2621  ;;  %v2116_v60 = vmul.f32 %v2620_v58, %v2618_v56 }
0x2c74   :  { %v2118_v61 = vmul.f32 0.6931472, %v2622_v59 }
0x2c75   :  { %2120 = vst [vmem:[#allocation11] sm:$0xff] %v2116_v60 }
0x2c76   :  { %v2119_v62 = vsub.f32 %v2110_v54, %v2118_v61 }
0x2c78   :  { %2121 = vst [vmem:[#allocation11 + $0x8] sm:$0xff] %v2119_v62 }
0x2c79   :  { %2754 = shalt.err (!%p2751_p6)
}
0x2c7a   :  { %2144 = dma.vmem_to_hbm [thread:$0]  %s2142_s27, 256, %s3229_s5, [#allocation4]  }
0x2c7b   :  { %2769 = dma.done.wait [#allocation4], 256  }
0x2c7c   :  { %2770 = vsyncadd [#allocation4], 4294967040 }
0x2c7d   :  { %2771 = dma.done.wait [#allocation13], 32  }
0x2c7e   :  { %2772 = vsyncadd [#allocation13], 4294967264 }
0x2c7f   :  { %2161 = vsyncpa [#allocation3], 1 }
0x2c80   :  { %2162 = vsyncpa [#allocation6], 1 }
0x2c81   :  { %2163 = vsyncpa [#allocation9], 1 }
0x2c82   :  { %2164 = vsyncpa [#allocation4], 1 }
0x2c83   :  { %2165 = vsyncpa [#allocation13], 1 }

</bundles_post_ra>
